<compile_context>
chip_gen: v6e
topology: v6e:2x2x1
jax: 0.10.0
libtpu: 0.0.40
codegen_flags: <defaults>
</compile_context>

<pallas_src>
import numpy as np

import jax
import jax.numpy as jnp
from jax.experimental import pallas as pl
from jax.experimental.pallas import tpu as pltpu


NUM_CLASSES = 10
_C1, _C2 = 16, 32                   # conv output channels
_K1_PAD = 32                        # conv1 contraction dim padded 27 -> 32
_H1 = _W1 = 16                      # spatial grid feeding conv2 (after pool1)
_NPOS2 = _H1 * _W1                  # 256 conv2 output positions
_NPOOL2 = (_H1 // 2) * (_W1 // 2)   # 64 pooled conv2 positions


def _build_pool2_compaction(h=_H1, w=_W1):
    """0/1 matrix (h*w, h*w/4): column hp*(w//2)+wp selects raster anchor (2hp, 2wp)."""
    c = np.zeros((h * w, (h // 2) * (w // 2)), dtype=np.float32)
    for hp in range(h // 2):
        for wp in range(w // 2):
            c[(2 * hp) * w + 2 * wp, hp * (w // 2) + wp] = 1.0
    return c


_C2POOL_NP = _build_pool2_compaction()


def fused_cnn_kernel(p1_ref, w1_ref, b1_ref, w2_ref, b2_ref, c2_ref,
                     wfc_ref, bfc_ref, o_ref):
    """Entire SimpleCNN forward for one image, VMEM/vreg-resident end to end.

    p1_ref : (1, 32, 1024) bf16  conv1 im2col patches; rows = (dh,dw,ci) tap (27->32
                                 zero-padded), cols = pool_phase*256 + q, q raster on
                                 the pooled 16x16 grid.
    w1_ref : (16, 32)  bf16      conv1 weights (columns match p1 rows).
    b1_ref : (16, 1)   f32
    w2_ref : (9, 32, 16) bf16    conv2 weights per tap t = kh*3+kw: (Cout, Cin).
    b2_ref : (32, 1)   f32
    c2_ref : (256, 64) bf16      constant 0/1 pool2 compaction (anchor selection).
    wfc_ref: (10, 32, 64) bf16   fc weights as [class, c2, pooled position].
    bfc_ref: (1, 10)   f32
    o_ref  : (1, 1, 10) f32      softmax probabilities.
    """
    # ---- conv1: one (16x32)@(32x1024) GEMM covering all 4 pool phases --------------
    y1 = jnp.dot(w1_ref[...], p1_ref[0], preferred_element_type=jnp.float32)  # (16,1024)
    pooled1 = y1[:, 0:_NPOS2]
    for ph in range(1, 4):                      # 2x2 max-pool = max over phase slices
        pooled1 = jnp.maximum(pooled1, y1[:, ph * _NPOS2:(ph + 1) * _NPOS2])
    a1 = jnp.maximum(pooled1 + b1_ref[...], 0.0)                              # (16,256) f32

    # ---- conv2: in-register im2col via 9 lane rolls + masks, 9 accumulating dots ---
    pos = jax.lax.broadcasted_iota(jnp.int32, (_C1, _NPOS2), 1)   # lane index p
    hh = pos >> 4                  # p // 16  (row on the 16x16 grid)
    ww = pos & (_W1 - 1)           # p % 16   (col on the 16x16 grid)
    y2 = jnp.zeros((_C2, _NPOS2), jnp.float32)
    for kh in range(3):
        for kw in range(3):
            oh, ow = kh - 1, kw - 1
            s = oh * _W1 + ow                              # flat raster shift of the tap
            if s == 0:
                tap = a1
            else:
                # out[p] = a1[(p + s) mod 256]  (jnp.roll semantics: shift = -s)
                tap = pltpu.roll(a1, (-s) % _NPOS2, 1)
            conds = []
            if oh < 0:
                conds.append(hh >= -oh)
            if oh > 0:
                conds.append(hh < _H1 - oh)
            if ow < 0:
                conds.append(ww >= -ow)
            if ow > 0:
                conds.append(ww < _W1 - ow)
            if conds:                                       # zero padding + wrap masking
                valid = conds[0]
                for extra in conds[1:]:
                    valid = valid & extra
                tap = jnp.where(valid, tap, 0.0)
            y2 = y2 + jnp.dot(w2_ref[kh * 3 + kw], tap.astype(jnp.bfloat16),
                              preferred_element_type=jnp.float32)             # (32,256)

    # ---- pool2: roll+max pairs, then 0/1 compaction GEMM (anchors only) ------------
    m1 = jnp.maximum(y2, pltpu.roll(y2, _NPOS2 - 1, 1))     # max(y2[p], y2[p+1])
    m2 = jnp.maximum(m1, pltpu.roll(m1, _NPOS2 - _W1, 1))   # 2x2 max at even (h, w)
    pooled2 = jnp.dot(m2.astype(jnp.bfloat16), c2_ref[...],
                      preferred_element_type=jnp.float32)                      # (32,64)
    a2 = jnp.maximum(pooled2 + b2_ref[...], 0.0)                               # (32,64) f32

    # ---- fc: per-class multiply + reduce (tiny, stays off the register-file cliff) -
    lane = jax.lax.broadcasted_iota(jnp.int32, (1, NUM_CLASSES), 1)
    logits = bfc_ref[...]                                                      # (1,10)
    for k in range(NUM_CLASSES):
        prod = wfc_ref[k].astype(jnp.float32) * a2                             # (32,64)
        sk = jnp.sum(prod, axis=1, keepdims=True)                              # (32,1)
        sk = jnp.sum(sk, axis=0, keepdims=True)                                # (1,1)
        logits = logits + jnp.where(lane == k, sk, 0.0)

    # ---- softmax over the 10 classes (lane axis) ------------------------------------
    mx = jnp.max(logits, axis=-1, keepdims=True)
    e = jnp.exp(logits - mx)
    o_ref[0] = (e / jnp.sum(e, axis=-1, keepdims=True)).astype(o_ref.dtype)


def _conv1_patches(x_nhwc):
    """Glue: im2col for conv1 (k=3, pad=1) -> (N, 32, 1024) bf16.

    Row k = (dh*3+dw)*Cin + ci (zero-padded 27 -> 32); column p = phase*256 + q with
    phase = 2*(h%2)+(w%2) (2x2 pool phase) and q = (h//2)*16 + (w//2).
    """
    n, h, w, cin = x_nhwc.shape
    xp = jnp.pad(x_nhwc, ((0, 0), (1, 1), (1, 1), (0, 0)))
    cols = jnp.concatenate(
        [xp[:, dh:dh + h, dw:dw + w, :] for dh in range(3) for dw in range(3)],
        axis=-1)                                            # (N, H, W, 9*Cin)
    k = 9 * cin
    c = cols.reshape(n, h // 2, 2, w // 2, 2, k)            # (N, hp, hbit, wp, wbit, K)
    c = c.transpose(0, 2, 4, 1, 3, 5)                       # (N, hbit, wbit, hp, wp, K)
    c = c.reshape(n, 4 * (h // 2) * (w // 2), k)            # (N, 1024, K)
    p = jnp.transpose(c, (0, 2, 1))                         # (N, K, 1024): K on sublanes
    if _K1_PAD > k:
        p = jnp.pad(p, ((0, 0), (0, _K1_PAD - k), (0, 0)))
    return p.astype(jnp.bfloat16)


def _conv_weight_matrix(w_oihw, k_pad=None):
    """Glue: OIHW conv weight -> (Cout, 9*Cin) bf16, columns ordered (dh, dw, ci)."""
    cout, cin, kh, kw = w_oihw.shape
    wm = jnp.transpose(w_oihw, (0, 2, 3, 1)).reshape(cout, kh * kw * cin)
    if k_pad is not None and k_pad > kh * kw * cin:
        wm = jnp.pad(wm, ((0, 0), (0, k_pad - kh * kw * cin)))
    return wm.astype(jnp.bfloat16)


def simple_cnn_forward(x_nchw, params):
    """SimpleCNN forward: NCHW input -> class probabilities, one fused pallas_call."""
    n = x_nchw.shape[0]
    x_nhwc = jnp.transpose(x_nchw, (0, 2, 3, 1))                 # (N, 32, 32, 3)

    p1 = _conv1_patches(x_nhwc)                                  # (N, 32, 1024) bf16
    w1 = _conv_weight_matrix(params["conv1_w"], k_pad=_K1_PAD)   # (16, 32) bf16
    b1 = params["conv1_b"].astype(jnp.float32).reshape(_C1, 1)
    w2 = jnp.transpose(params["conv2_w"], (2, 3, 0, 1)).reshape(9, _C2, _C1)
    w2 = w2.astype(jnp.bfloat16)                                 # (9, 32, 16) bf16
    b2 = params["conv2_b"].astype(jnp.float32).reshape(_C2, 1)
    c2 = jnp.asarray(_C2POOL_NP, dtype=jnp.bfloat16)             # (256, 64) bf16
    # fc weight: NCHW flatten index = c2*64 + (hp*8+wp) == kernel's a2[c2, m] layout.
    wfc = params["fc_w"].reshape(NUM_CLASSES, _C2, _NPOOL2).astype(jnp.bfloat16)
    bfc = params["fc_b"].astype(jnp.float32).reshape(1, NUM_CLASSES)

    flops = 2 * n * (_C1 * _K1_PAD * 4 * _NPOS2        # conv1 GEMM
                     + 9 * _C2 * _C1 * _NPOS2          # conv2 (9 tap dots)
                     + _C2 * _NPOS2 * _NPOOL2          # pool2 compaction GEMM
                     + NUM_CLASSES * _C2 * _NPOOL2)    # fc
    resident = (w1, b1, w2, b2, c2, wfc, bfc)
    bytes_accessed = (p1.size * p1.dtype.itemsize
                      + sum(a.size * a.dtype.itemsize for a in resident)
                      + n * NUM_CLASSES * 4)

    # NOTE: on single-TC v5e/v6e, fold the (small) batch into the lane axis of one grid
    # step instead of grid=(n,) to save ~0.35us/step; kept parallel-over-batch for v7x.
    probs = pl.pallas_call(
        fused_cnn_kernel,
        out_shape=jax.ShapeDtypeStruct((n, 1, NUM_CLASSES), jnp.float32),
        grid=(n,),
        in_specs=[
            pl.BlockSpec((1, _K1_PAD, 4 * _NPOS2), lambda i: (i, 0, 0)),   # per-image patches
            pl.BlockSpec((_C1, _K1_PAD), lambda i: (0, 0)),                # resident weights
            pl.BlockSpec((_C1, 1), lambda i: (0, 0)),
            pl.BlockSpec((9, _C2, _C1), lambda i: (0, 0, 0)),
            pl.BlockSpec((_C2, 1), lambda i: (0, 0)),
            pl.BlockSpec((_NPOS2, _NPOOL2), lambda i: (0, 0)),
            pl.BlockSpec((NUM_CLASSES, _C2, _NPOOL2), lambda i: (0, 0, 0)),
            pl.BlockSpec((1, NUM_CLASSES), lambda i: (0, 0)),
        ],
        out_specs=pl.BlockSpec((1, 1, NUM_CLASSES), lambda i: (i, 0, 0)),
        compiler_params=pltpu.CompilerParams(
            dimension_semantics=("parallel",)),                  # batch -> both v7x TCs
        cost_estimate=pl.CostEstimate(flops=flops, transcendentals=n * NUM_CLASSES,
                                      bytes_accessed=bytes_accessed),
    )(p1, w1, b1, w2, b2, c2, wfc, bfc)
    return probs.reshape(n, NUM_CLASSES)


def reference_forward(x_nchw, params):
    """Pure-JAX f32 reference of the same forward, for validation."""
    def conv(x, w, b):
        y = jax.lax.conv_general_dilated(
            x, w, window_strides=(1, 1), padding=((1, 1), (1, 1)),
            dimension_numbers=("NCHW", "OIHW", "NCHW"))
        return y + b[None, :, None, None]

    def pool(x):
        return jax.lax.reduce_window(x, -jnp.inf, jax.lax.max,
                                     (1, 1, 2, 2), (1, 1, 2, 2), "VALID")

    x = pool(jax.nn.relu(conv(x_nchw, params["conv1_w"], params["conv1_b"])))
    x = pool(jax.nn.relu(conv(x, params["conv2_w"], params["conv2_b"])))
    x = x.reshape(x.shape[0], -1)
    logits = x @ params["fc_w"].T + params["fc_b"]
    return jax.nn.softmax(logits, axis=1)


def init_params(key, num_classes=NUM_CLASSES):
    ks = jax.random.split(key, 6)

    def u(k, shape, fan_in):
        bound = 1.0 / jnp.sqrt(float(fan_in))
        return jax.random.uniform(k, shape, jnp.float32, -bound, bound)

    return {
        "conv1_w": u(ks[0], (16, 3, 3, 3), 3 * 9),        # OIHW, like torch
        "conv1_b": u(ks[1], (16,), 3 * 9),
        "conv2_w": u(ks[2], (32, 16, 3, 3), 16 * 9),
        "conv2_b": u(ks[3], (32,), 16 * 9),
        "fc_w": u(ks[4], (num_classes, 32 * 8 * 8), 32 * 8 * 8),   # (out, in)
        "fc_b": u(ks[5], (num_classes,), 32 * 8 * 8),
    }


if __name__ == "__main__":
    key = jax.random.PRNGKey(0)
    kx, kp = jax.random.split(key)
    # fc expects 32*8*8 features => 3-channel 32x32 NCHW input.
    x = jax.random.normal(kx, (2, 3, 32, 32), jnp.float32)
    params = init_params(kp)

    probs = jax.jit(simple_cnn_forward)(x, params)
    probs = jax.block_until_ready(probs)

    ref = reference_forward(x, params)

    assert probs.shape == (2, NUM_CLASSES)
    assert bool(jnp.all(jnp.isfinite(probs)))
    assert bool(jnp.allclose(jnp.sum(probs, axis=1), 1.0, atol=1e-5))
    # bf16 matmul operands => loose tolerance vs the f32 reference.
    assert bool(jnp.allclose(probs, ref, atol=2e-2))
    print("KERNEL_OK")
</pallas_src>

<mosaic_0001>
module attributes {stable_mosaic.version = 11 : i64} {
  func.func @fused_cnn_kernel(%arg0: i32, %arg1: memref<1x32x1024xbf16, #tpu.memory_space<vmem>>, %arg2: memref<16x32xbf16, #tpu.memory_space<vmem>>, %arg3: memref<16x1xf32, #tpu.memory_space<vmem>>, %arg4: memref<9x32x16xbf16, #tpu.memory_space<vmem>>, %arg5: memref<32x1xf32, #tpu.memory_space<vmem>>, %arg6: memref<256x64xbf16, #tpu.memory_space<vmem>>, %arg7: memref<10x32x64xbf16, #tpu.memory_space<vmem>>, %arg8: memref<1x10xf32, #tpu.memory_space<vmem>>, %arg9: memref<1x1x10xf32, #tpu.memory_space<vmem>>) attributes {dimension_semantics = [#tpu.dimension_semantics<parallel>], iteration_bounds = array<i64: 2>, scalar_prefetch = 0 : i64, scratch_operands = 0 : i64, tpu.core_type = #tpu.core_type<tc>, window_params = [{transform_indices = @transform_0, window_bounds = array<i64: 1, 32, 1024>}, {pipeline_mode = #tpu.pipeline_mode<synchronous>, transform_indices = @transform_1, window_bounds = array<i64: 16, 32>}, {pipeline_mode = #tpu.pipeline_mode<synchronous>, transform_indices = @transform_2, window_bounds = array<i64: 16, 1>}, {pipeline_mode = #tpu.pipeline_mode<synchronous>, transform_indices = @transform_3, window_bounds = array<i64: 9, 32, 16>}, {pipeline_mode = #tpu.pipeline_mode<synchronous>, transform_indices = @transform_4, window_bounds = array<i64: 32, 1>}, {pipeline_mode = #tpu.pipeline_mode<synchronous>, transform_indices = @transform_5, window_bounds = array<i64: 256, 64>}, {pipeline_mode = #tpu.pipeline_mode<synchronous>, transform_indices = @transform_6, window_bounds = array<i64: 10, 32, 64>}, {pipeline_mode = #tpu.pipeline_mode<synchronous>, transform_indices = @transform_7, window_bounds = array<i64: 1, 10>}, {transform_indices = @transform_8, window_bounds = array<i64: 1, 1, 10>}]} {
    %c0 = arith.constant 0 : index
    %c0_0 = arith.constant 0 : index
    %0 = vector.load %arg2[%c0, %c0_0] : memref<16x32xbf16, #tpu.memory_space<vmem>>, vector<16x32xbf16>
    %c0_1 = arith.constant 0 : index
    %c0_2 = arith.constant 0 : index
    %c0_3 = arith.constant 0 : index
    %1 = vector.load %arg1[%c0_1, %c0_2, %c0_3] : memref<1x32x1024xbf16, #tpu.memory_space<vmem>>, vector<1x32x1024xbf16>
    %2 = vector.shape_cast %1 : vector<1x32x1024xbf16> to vector<32x1024xbf16>
    %cst = arith.constant dense<0.000000e+00> : vector<16x1024xf32>
    %3 = tpu.matmul %0, %2, %cst {dimension_numbers = #tpu.dot_dimension_numbers<[1], [0], [0], [1], [0, 0, 1, 1], [], []>} : vector<16x32xbf16>, vector<32x1024xbf16>, vector<16x1024xf32> -> vector<16x1024xf32>
    %4 = vector.extract_strided_slice %3 {offsets = [0, 0], sizes = [16, 256], strides = [1, 1]} : vector<16x1024xf32> to vector<16x256xf32>
    %5 = vector.extract_strided_slice %3 {offsets = [0, 256], sizes = [16, 256], strides = [1, 1]} : vector<16x1024xf32> to vector<16x256xf32>
    %6 = arith.maximumf %4, %5 : vector<16x256xf32>
    %7 = vector.extract_strided_slice %3 {offsets = [0, 512], sizes = [16, 256], strides = [1, 1]} : vector<16x1024xf32> to vector<16x256xf32>
    %8 = arith.maximumf %6, %7 : vector<16x256xf32>
    %9 = vector.extract_strided_slice %3 {offsets = [0, 768], sizes = [16, 256], strides = [1, 1]} : vector<16x1024xf32> to vector<16x256xf32>
    %10 = arith.maximumf %8, %9 : vector<16x256xf32>
    %c0_4 = arith.constant 0 : index
    %c0_5 = arith.constant 0 : index
    %11 = vector.load %arg3[%c0_4, %c0_5] : memref<16x1xf32, #tpu.memory_space<vmem>>, vector<16x1xf32>
    %12 = vector.broadcast %11 : vector<16x1xf32> to vector<16x256xf32>
    %13 = arith.addf %10, %12 : vector<16x256xf32>
    %cst_6 = arith.constant 0.000000e+00 : f32
    %14 = vector.broadcast %cst_6 : f32 to vector<16x256xf32>
    %15 = arith.maximumf %13, %14 : vector<16x256xf32>
    %16 = tpu.iota {dimensions = array<i32: 1>} : vector<16x256xi32>
    %c4_i32 = arith.constant 4 : i32
    %17 = vector.broadcast %c4_i32 : i32 to vector<16x256xi32>
    %18 = arith.shrsi %16, %17 : vector<16x256xi32>
    %c15_i32 = arith.constant 15 : i32
    %19 = vector.broadcast %c15_i32 : i32 to vector<16x256xi32>
    %20 = arith.andi %16, %19 : vector<16x256xi32>
    %cst_7 = arith.constant 0.000000e+00 : f32
    %21 = vector.broadcast %cst_7 : f32 to vector<32x256xf32>
    %c17_i32 = arith.constant 17 : i32
    %22 = tpu.dynamic_rotate %15 by %c17_i32 dim 1 : vector<16x256xf32>, i32 -> vector<16x256xf32>
    %c1_i32 = arith.constant 1 : i32
    %23 = vector.broadcast %c1_i32 : i32 to vector<16x256xi32>
    %24 = arith.cmpi sge, %18, %23 : vector<16x256xi32>
    %c1_i32_8 = arith.constant 1 : i32
    %25 = vector.broadcast %c1_i32_8 : i32 to vector<16x256xi32>
    %26 = arith.cmpi sge, %20, %25 : vector<16x256xi32>
    %27 = arith.andi %24, %26 : vector<16x256xi1>
    %cst_9 = arith.constant 0.000000e+00 : f32
    %28 = vector.broadcast %cst_9 : f32 to vector<16x256xf32>
    %29 = arith.select %27, %22, %28 : vector<16x256xi1>, vector<16x256xf32>
    %c0_10 = arith.constant 0 : index
    %c0_11 = arith.constant 0 : index
    %c0_12 = arith.constant 0 : index
    %30 = vector.load %arg4[%c0_10, %c0_11, %c0_12] : memref<9x32x16xbf16, #tpu.memory_space<vmem>>, vector<1x32x16xbf16>
    %31 = vector.shape_cast %30 : vector<1x32x16xbf16> to vector<32x16xbf16>
    %32 = arith.truncf %29 : vector<16x256xf32> to vector<16x256xbf16>
    %cst_13 = arith.constant dense<0.000000e+00> : vector<32x256xf32>
    %33 = tpu.matmul %31, %32, %cst_13 {dimension_numbers = #tpu.dot_dimension_numbers<[1], [0], [0], [1], [0, 0, 1, 1], [], []>} : vector<32x16xbf16>, vector<16x256xbf16>, vector<32x256xf32> -> vector<32x256xf32>
    %34 = arith.addf %21, %33 : vector<32x256xf32>
    %c16_i32 = arith.constant 16 : i32
    %35 = tpu.dynamic_rotate %15 by %c16_i32 dim 1 : vector<16x256xf32>, i32 -> vector<16x256xf32>
    %c1_i32_14 = arith.constant 1 : i32
    %36 = vector.broadcast %c1_i32_14 : i32 to vector<16x256xi32>
    %37 = arith.cmpi sge, %18, %36 : vector<16x256xi32>
    %cst_15 = arith.constant 0.000000e+00 : f32
    %38 = vector.broadcast %cst_15 : f32 to vector<16x256xf32>
    %39 = arith.select %37, %35, %38 : vector<16x256xi1>, vector<16x256xf32>
    %c1 = arith.constant 1 : index
    %c0_16 = arith.constant 0 : index
    %c0_17 = arith.constant 0 : index
    %40 = vector.load %arg4[%c1, %c0_16, %c0_17] : memref<9x32x16xbf16, #tpu.memory_space<vmem>>, vector<1x32x16xbf16>
    %41 = vector.shape_cast %40 : vector<1x32x16xbf16> to vector<32x16xbf16>
    %42 = arith.truncf %39 : vector<16x256xf32> to vector<16x256xbf16>
    %cst_18 = arith.constant dense<0.000000e+00> : vector<32x256xf32>
    %43 = tpu.matmul %41, %42, %cst_18 {dimension_numbers = #tpu.dot_dimension_numbers<[1], [0], [0], [1], [0, 0, 1, 1], [], []>} : vector<32x16xbf16>, vector<16x256xbf16>, vector<32x256xf32> -> vector<32x256xf32>
    %44 = arith.addf %34, %43 : vector<32x256xf32>
    %c15_i32_19 = arith.constant 15 : i32
    %45 = tpu.dynamic_rotate %15 by %c15_i32_19 dim 1 : vector<16x256xf32>, i32 -> vector<16x256xf32>
    %c1_i32_20 = arith.constant 1 : i32
    %46 = vector.broadcast %c1_i32_20 : i32 to vector<16x256xi32>
    %47 = arith.cmpi sge, %18, %46 : vector<16x256xi32>
    %c15_i32_21 = arith.constant 15 : i32
    %48 = vector.broadcast %c15_i32_21 : i32 to vector<16x256xi32>
    %49 = arith.cmpi slt, %20, %48 : vector<16x256xi32>
    %50 = arith.andi %47, %49 : vector<16x256xi1>
    %cst_22 = arith.constant 0.000000e+00 : f32
    %51 = vector.broadcast %cst_22 : f32 to vector<16x256xf32>
    %52 = arith.select %50, %45, %51 : vector<16x256xi1>, vector<16x256xf32>
    %c2 = arith.constant 2 : index
    %c0_23 = arith.constant 0 : index
    %c0_24 = arith.constant 0 : index
    %53 = vector.load %arg4[%c2, %c0_23, %c0_24] : memref<9x32x16xbf16, #tpu.memory_space<vmem>>, vector<1x32x16xbf16>
    %54 = vector.shape_cast %53 : vector<1x32x16xbf16> to vector<32x16xbf16>
    %55 = arith.truncf %52 : vector<16x256xf32> to vector<16x256xbf16>
    %cst_25 = arith.constant dense<0.000000e+00> : vector<32x256xf32>
    %56 = tpu.matmul %54, %55, %cst_25 {dimension_numbers = #tpu.dot_dimension_numbers<[1], [0], [0], [1], [0, 0, 1, 1], [], []>} : vector<32x16xbf16>, vector<16x256xbf16>, vector<32x256xf32> -> vector<32x256xf32>
    %57 = arith.addf %44, %56 : vector<32x256xf32>
    %c1_i32_26 = arith.constant 1 : i32
    %58 = tpu.dynamic_rotate %15 by %c1_i32_26 dim 1 : vector<16x256xf32>, i32 -> vector<16x256xf32>
    %c1_i32_27 = arith.constant 1 : i32
    %59 = vector.broadcast %c1_i32_27 : i32 to vector<16x256xi32>
    %60 = arith.cmpi sge, %20, %59 : vector<16x256xi32>
    %cst_28 = arith.constant 0.000000e+00 : f32
    %61 = vector.broadcast %cst_28 : f32 to vector<16x256xf32>
    %62 = arith.select %60, %58, %61 : vector<16x256xi1>, vector<16x256xf32>
    %c3 = arith.constant 3 : index
    %c0_29 = arith.constant 0 : index
    %c0_30 = arith.constant 0 : index
    %63 = vector.load %arg4[%c3, %c0_29, %c0_30] : memref<9x32x16xbf16, #tpu.memory_space<vmem>>, vector<1x32x16xbf16>
    %64 = vector.shape_cast %63 : vector<1x32x16xbf16> to vector<32x16xbf16>
    %65 = arith.truncf %62 : vector<16x256xf32> to vector<16x256xbf16>
    %cst_31 = arith.constant dense<0.000000e+00> : vector<32x256xf32>
    %66 = tpu.matmul %64, %65, %cst_31 {dimension_numbers = #tpu.dot_dimension_numbers<[1], [0], [0], [1], [0, 0, 1, 1], [], []>} : vector<32x16xbf16>, vector<16x256xbf16>, vector<32x256xf32> -> vector<32x256xf32>
    %67 = arith.addf %57, %66 : vector<32x256xf32>
    %c4 = arith.constant 4 : index
    %c0_32 = arith.constant 0 : index
    %c0_33 = arith.constant 0 : index
    %68 = vector.load %arg4[%c4, %c0_32, %c0_33] : memref<9x32x16xbf16, #tpu.memory_space<vmem>>, vector<1x32x16xbf16>
    %69 = vector.shape_cast %68 : vector<1x32x16xbf16> to vector<32x16xbf16>
    %70 = arith.truncf %15 : vector<16x256xf32> to vector<16x256xbf16>
    %cst_34 = arith.constant dense<0.000000e+00> : vector<32x256xf32>
    %71 = tpu.matmul %69, %70, %cst_34 {dimension_numbers = #tpu.dot_dimension_numbers<[1], [0], [0], [1], [0, 0, 1, 1], [], []>} : vector<32x16xbf16>, vector<16x256xbf16>, vector<32x256xf32> -> vector<32x256xf32>
    %72 = arith.addf %67, %71 : vector<32x256xf32>
    %c255_i32 = arith.constant 255 : i32
    %73 = tpu.dynamic_rotate %15 by %c255_i32 dim 1 : vector<16x256xf32>, i32 -> vector<16x256xf32>
    %c15_i32_35 = arith.constant 15 : i32
    %74 = vector.broadcast %c15_i32_35 : i32 to vector<16x256xi32>
    %75 = arith.cmpi slt, %20, %74 : vector<16x256xi32>
    %cst_36 = arith.constant 0.000000e+00 : f32
    %76 = vector.broadcast %cst_36 : f32 to vector<16x256xf32>
    %77 = arith.select %75, %73, %76 : vector<16x256xi1>, vector<16x256xf32>
    %c5 = arith.constant 5 : index
    %c0_37 = arith.constant 0 : index
    %c0_38 = arith.constant 0 : index
    %78 = vector.load %arg4[%c5, %c0_37, %c0_38] : memref<9x32x16xbf16, #tpu.memory_space<vmem>>, vector<1x32x16xbf16>
    %79 = vector.shape_cast %78 : vector<1x32x16xbf16> to vector<32x16xbf16>
    %80 = arith.truncf %77 : vector<16x256xf32> to vector<16x256xbf16>
    %cst_39 = arith.constant dense<0.000000e+00> : vector<32x256xf32>
    %81 = tpu.matmul %79, %80, %cst_39 {dimension_numbers = #tpu.dot_dimension_numbers<[1], [0], [0], [1], [0, 0, 1, 1], [], []>} : vector<32x16xbf16>, vector<16x256xbf16>, vector<32x256xf32> -> vector<32x256xf32>
    %82 = arith.addf %72, %81 : vector<32x256xf32>
    %c241_i32 = arith.constant 241 : i32
    %83 = tpu.dynamic_rotate %15 by %c241_i32 dim 1 : vector<16x256xf32>, i32 -> vector<16x256xf32>
    %c15_i32_40 = arith.constant 15 : i32
    %84 = vector.broadcast %c15_i32_40 : i32 to vector<16x256xi32>
    %85 = arith.cmpi slt, %18, %84 : vector<16x256xi32>
    %c1_i32_41 = arith.constant 1 : i32
    %86 = vector.broadcast %c1_i32_41 : i32 to vector<16x256xi32>
    %87 = arith.cmpi sge, %20, %86 : vector<16x256xi32>
    %88 = arith.andi %85, %87 : vector<16x256xi1>
    %cst_42 = arith.constant 0.000000e+00 : f32
    %89 = vector.broadcast %cst_42 : f32 to vector<16x256xf32>
    %90 = arith.select %88, %83, %89 : vector<16x256xi1>, vector<16x256xf32>
    %c6 = arith.constant 6 : index
    %c0_43 = arith.constant 0 : index
    %c0_44 = arith.constant 0 : index
    %91 = vector.load %arg4[%c6, %c0_43, %c0_44] : memref<9x32x16xbf16, #tpu.memory_space<vmem>>, vector<1x32x16xbf16>
    %92 = vector.shape_cast %91 : vector<1x32x16xbf16> to vector<32x16xbf16>
    %93 = arith.truncf %90 : vector<16x256xf32> to vector<16x256xbf16>
    %cst_45 = arith.constant dense<0.000000e+00> : vector<32x256xf32>
    %94 = tpu.matmul %92, %93, %cst_45 {dimension_numbers = #tpu.dot_dimension_numbers<[1], [0], [0], [1], [0, 0, 1, 1], [], []>} : vector<32x16xbf16>, vector<16x256xbf16>, vector<32x256xf32> -> vector<32x256xf32>
    %95 = arith.addf %82, %94 : vector<32x256xf32>
    %c240_i32 = arith.constant 240 : i32
    %96 = tpu.dynamic_rotate %15 by %c240_i32 dim 1 : vector<16x256xf32>, i32 -> vector<16x256xf32>
    %c15_i32_46 = arith.constant 15 : i32
    %97 = vector.broadcast %c15_i32_46 : i32 to vector<16x256xi32>
    %98 = arith.cmpi slt, %18, %97 : vector<16x256xi32>
    %cst_47 = arith.constant 0.000000e+00 : f32
    %99 = vector.broadcast %cst_47 : f32 to vector<16x256xf32>
    %100 = arith.select %98, %96, %99 : vector<16x256xi1>, vector<16x256xf32>
    %c7 = arith.constant 7 : index
    %c0_48 = arith.constant 0 : index
    %c0_49 = arith.constant 0 : index
    %101 = vector.load %arg4[%c7, %c0_48, %c0_49] : memref<9x32x16xbf16, #tpu.memory_space<vmem>>, vector<1x32x16xbf16>
    %102 = vector.shape_cast %101 : vector<1x32x16xbf16> to vector<32x16xbf16>
    %103 = arith.truncf %100 : vector<16x256xf32> to vector<16x256xbf16>
    %cst_50 = arith.constant dense<0.000000e+00> : vector<32x256xf32>
    %104 = tpu.matmul %102, %103, %cst_50 {dimension_numbers = #tpu.dot_dimension_numbers<[1], [0], [0], [1], [0, 0, 1, 1], [], []>} : vector<32x16xbf16>, vector<16x256xbf16>, vector<32x256xf32> -> vector<32x256xf32>
    %105 = arith.addf %95, %104 : vector<32x256xf32>
    %c239_i32 = arith.constant 239 : i32
    %106 = tpu.dynamic_rotate %15 by %c239_i32 dim 1 : vector<16x256xf32>, i32 -> vector<16x256xf32>
    %c15_i32_51 = arith.constant 15 : i32
    %107 = vector.broadcast %c15_i32_51 : i32 to vector<16x256xi32>
    %108 = arith.cmpi slt, %18, %107 : vector<16x256xi32>
    %c15_i32_52 = arith.constant 15 : i32
    %109 = vector.broadcast %c15_i32_52 : i32 to vector<16x256xi32>
    %110 = arith.cmpi slt, %20, %109 : vector<16x256xi32>
    %111 = arith.andi %108, %110 : vector<16x256xi1>
    %cst_53 = arith.constant 0.000000e+00 : f32
    %112 = vector.broadcast %cst_53 : f32 to vector<16x256xf32>
    %113 = arith.select %111, %106, %112 : vector<16x256xi1>, vector<16x256xf32>
    %c8 = arith.constant 8 : index
    %c0_54 = arith.constant 0 : index
    %c0_55 = arith.constant 0 : index
    %114 = vector.load %arg4[%c8, %c0_54, %c0_55] : memref<9x32x16xbf16, #tpu.memory_space<vmem>>, vector<1x32x16xbf16>
    %115 = vector.shape_cast %114 : vector<1x32x16xbf16> to vector<32x16xbf16>
    %116 = arith.truncf %113 : vector<16x256xf32> to vector<16x256xbf16>
    %cst_56 = arith.constant dense<0.000000e+00> : vector<32x256xf32>
    %117 = tpu.matmul %115, %116, %cst_56 {dimension_numbers = #tpu.dot_dimension_numbers<[1], [0], [0], [1], [0, 0, 1, 1], [], []>} : vector<32x16xbf16>, vector<16x256xbf16>, vector<32x256xf32> -> vector<32x256xf32>
    %118 = arith.addf %105, %117 : vector<32x256xf32>
    %c255_i32_57 = arith.constant 255 : i32
    %119 = tpu.dynamic_rotate %118 by %c255_i32_57 dim 1 : vector<32x256xf32>, i32 -> vector<32x256xf32>
    %120 = arith.maximumf %118, %119 : vector<32x256xf32>
    %c240_i32_58 = arith.constant 240 : i32
    %121 = tpu.dynamic_rotate %120 by %c240_i32_58 dim 1 : vector<32x256xf32>, i32 -> vector<32x256xf32>
    %122 = arith.maximumf %120, %121 : vector<32x256xf32>
    %123 = arith.truncf %122 : vector<32x256xf32> to vector<32x256xbf16>
    %c0_59 = arith.constant 0 : index
    %c0_60 = arith.constant 0 : index
    %124 = vector.load %arg6[%c0_59, %c0_60] : memref<256x64xbf16, #tpu.memory_space<vmem>>, vector<256x64xbf16>
    %cst_61 = arith.constant dense<0.000000e+00> : vector<32x64xf32>
    %125 = tpu.matmul %123, %124, %cst_61 {dimension_numbers = #tpu.dot_dimension_numbers<[1], [0], [0], [1], [0, 0, 1, 1], [], []>} : vector<32x256xbf16>, vector<256x64xbf16>, vector<32x64xf32> -> vector<32x64xf32>
    %c0_62 = arith.constant 0 : index
    %c0_63 = arith.constant 0 : index
    %126 = vector.load %arg5[%c0_62, %c0_63] : memref<32x1xf32, #tpu.memory_space<vmem>>, vector<32x1xf32>
    %127 = vector.broadcast %126 : vector<32x1xf32> to vector<32x64xf32>
    %128 = arith.addf %125, %127 : vector<32x64xf32>
    %cst_64 = arith.constant 0.000000e+00 : f32
    %129 = vector.broadcast %cst_64 : f32 to vector<32x64xf32>
    %130 = arith.maximumf %128, %129 : vector<32x64xf32>
    %131 = tpu.iota {dimensions = array<i32: 1>} : vector<1x10xi32>
    %c0_65 = arith.constant 0 : index
    %c0_66 = arith.constant 0 : index
    %132 = vector.load %arg8[%c0_65, %c0_66] : memref<1x10xf32, #tpu.memory_space<vmem>>, vector<1x10xf32>
    %c0_67 = arith.constant 0 : index
    %c0_68 = arith.constant 0 : index
    %c0_69 = arith.constant 0 : index
    %133 = vector.load %arg7[%c0_67, %c0_68, %c0_69] : memref<10x32x64xbf16, #tpu.memory_space<vmem>>, vector<1x32x64xbf16>
    %134 = vector.shape_cast %133 : vector<1x32x64xbf16> to vector<32x64xbf16>
    %135 = arith.extf %134 : vector<32x64xbf16> to vector<32x64xf32>
    %136 = arith.mulf %135, %130 : vector<32x64xf32>
    %cst_70 = arith.constant dense<0.000000e+00> : vector<32xf32>
    %137 = vector.multi_reduction <add>, %136, %cst_70 [1] : vector<32x64xf32> to vector<32xf32>
    %138 = vector.shape_cast %137 : vector<32xf32> to vector<32x1xf32>
    %cst_71 = arith.constant dense<0.000000e+00> : vector<1xf32>
    %139 = vector.multi_reduction <add>, %138, %cst_71 [0] : vector<32x1xf32> to vector<1xf32>
    %140 = vector.shape_cast %139 : vector<1xf32> to vector<1x1xf32>
    %c0_i32 = arith.constant 0 : i32
    %141 = vector.broadcast %c0_i32 : i32 to vector<1x10xi32>
    %142 = arith.cmpi eq, %131, %141 : vector<1x10xi32>
    %cst_72 = arith.constant 0.000000e+00 : f32
    %143 = vector.shape_cast %140 : vector<1x1xf32> to vector<1x1xf32>
    %144 = vector.broadcast %143 : vector<1x1xf32> to vector<1x10xf32>
    %145 = vector.broadcast %cst_72 : f32 to vector<1x10xf32>
    %146 = arith.select %142, %144, %145 : vector<1x10xi1>, vector<1x10xf32>
    %147 = arith.addf %132, %146 : vector<1x10xf32>
    %c1_73 = arith.constant 1 : index
    %c0_74 = arith.constant 0 : index
    %c0_75 = arith.constant 0 : index
    %148 = vector.load %arg7[%c1_73, %c0_74, %c0_75] : memref<10x32x64xbf16, #tpu.memory_space<vmem>>, vector<1x32x64xbf16>
    %149 = vector.shape_cast %148 : vector<1x32x64xbf16> to vector<32x64xbf16>
    %150 = arith.extf %149 : vector<32x64xbf16> to vector<32x64xf32>
    %151 = arith.mulf %150, %130 : vector<32x64xf32>
    %cst_76 = arith.constant dense<0.000000e+00> : vector<32xf32>
    %152 = vector.multi_reduction <add>, %151, %cst_76 [1] : vector<32x64xf32> to vector<32xf32>
    %153 = vector.shape_cast %152 : vector<32xf32> to vector<32x1xf32>
    %cst_77 = arith.constant dense<0.000000e+00> : vector<1xf32>
    %154 = vector.multi_reduction <add>, %153, %cst_77 [0] : vector<32x1xf32> to vector<1xf32>
    %155 = vector.shape_cast %154 : vector<1xf32> to vector<1x1xf32>
    %c1_i32_78 = arith.constant 1 : i32
    %156 = vector.broadcast %c1_i32_78 : i32 to vector<1x10xi32>
    %157 = arith.cmpi eq, %131, %156 : vector<1x10xi32>
    %cst_79 = arith.constant 0.000000e+00 : f32
    %158 = vector.shape_cast %155 : vector<1x1xf32> to vector<1x1xf32>
    %159 = vector.broadcast %158 : vector<1x1xf32> to vector<1x10xf32>
    %160 = vector.broadcast %cst_79 : f32 to vector<1x10xf32>
    %161 = arith.select %157, %159, %160 : vector<1x10xi1>, vector<1x10xf32>
    %162 = arith.addf %147, %161 : vector<1x10xf32>
    %c2_80 = arith.constant 2 : index
    %c0_81 = arith.constant 0 : index
    %c0_82 = arith.constant 0 : index
    %163 = vector.load %arg7[%c2_80, %c0_81, %c0_82] : memref<10x32x64xbf16, #tpu.memory_space<vmem>>, vector<1x32x64xbf16>
    %164 = vector.shape_cast %163 : vector<1x32x64xbf16> to vector<32x64xbf16>
    %165 = arith.extf %164 : vector<32x64xbf16> to vector<32x64xf32>
    %166 = arith.mulf %165, %130 : vector<32x64xf32>
    %cst_83 = arith.constant dense<0.000000e+00> : vector<32xf32>
    %167 = vector.multi_reduction <add>, %166, %cst_83 [1] : vector<32x64xf32> to vector<32xf32>
    %168 = vector.shape_cast %167 : vector<32xf32> to vector<32x1xf32>
    %cst_84 = arith.constant dense<0.000000e+00> : vector<1xf32>
    %169 = vector.multi_reduction <add>, %168, %cst_84 [0] : vector<32x1xf32> to vector<1xf32>
    %170 = vector.shape_cast %169 : vector<1xf32> to vector<1x1xf32>
    %c2_i32 = arith.constant 2 : i32
    %171 = vector.broadcast %c2_i32 : i32 to vector<1x10xi32>
    %172 = arith.cmpi eq, %131, %171 : vector<1x10xi32>
    %cst_85 = arith.constant 0.000000e+00 : f32
    %173 = vector.shape_cast %170 : vector<1x1xf32> to vector<1x1xf32>
    %174 = vector.broadcast %173 : vector<1x1xf32> to vector<1x10xf32>
    %175 = vector.broadcast %cst_85 : f32 to vector<1x10xf32>
    %176 = arith.select %172, %174, %175 : vector<1x10xi1>, vector<1x10xf32>
    %177 = arith.addf %162, %176 : vector<1x10xf32>
    %c3_86 = arith.constant 3 : index
    %c0_87 = arith.constant 0 : index
    %c0_88 = arith.constant 0 : index
    %178 = vector.load %arg7[%c3_86, %c0_87, %c0_88] : memref<10x32x64xbf16, #tpu.memory_space<vmem>>, vector<1x32x64xbf16>
    %179 = vector.shape_cast %178 : vector<1x32x64xbf16> to vector<32x64xbf16>
    %180 = arith.extf %179 : vector<32x64xbf16> to vector<32x64xf32>
    %181 = arith.mulf %180, %130 : vector<32x64xf32>
    %cst_89 = arith.constant dense<0.000000e+00> : vector<32xf32>
    %182 = vector.multi_reduction <add>, %181, %cst_89 [1] : vector<32x64xf32> to vector<32xf32>
    %183 = vector.shape_cast %182 : vector<32xf32> to vector<32x1xf32>
    %cst_90 = arith.constant dense<0.000000e+00> : vector<1xf32>
    %184 = vector.multi_reduction <add>, %183, %cst_90 [0] : vector<32x1xf32> to vector<1xf32>
    %185 = vector.shape_cast %184 : vector<1xf32> to vector<1x1xf32>
    %c3_i32 = arith.constant 3 : i32
    %186 = vector.broadcast %c3_i32 : i32 to vector<1x10xi32>
    %187 = arith.cmpi eq, %131, %186 : vector<1x10xi32>
    %cst_91 = arith.constant 0.000000e+00 : f32
    %188 = vector.shape_cast %185 : vector<1x1xf32> to vector<1x1xf32>
    %189 = vector.broadcast %188 : vector<1x1xf32> to vector<1x10xf32>
    %190 = vector.broadcast %cst_91 : f32 to vector<1x10xf32>
    %191 = arith.select %187, %189, %190 : vector<1x10xi1>, vector<1x10xf32>
    %192 = arith.addf %177, %191 : vector<1x10xf32>
    %c4_92 = arith.constant 4 : index
    %c0_93 = arith.constant 0 : index
    %c0_94 = arith.constant 0 : index
    %193 = vector.load %arg7[%c4_92, %c0_93, %c0_94] : memref<10x32x64xbf16, #tpu.memory_space<vmem>>, vector<1x32x64xbf16>
    %194 = vector.shape_cast %193 : vector<1x32x64xbf16> to vector<32x64xbf16>
    %195 = arith.extf %194 : vector<32x64xbf16> to vector<32x64xf32>
    %196 = arith.mulf %195, %130 : vector<32x64xf32>
    %cst_95 = arith.constant dense<0.000000e+00> : vector<32xf32>
    %197 = vector.multi_reduction <add>, %196, %cst_95 [1] : vector<32x64xf32> to vector<32xf32>
    %198 = vector.shape_cast %197 : vector<32xf32> to vector<32x1xf32>
    %cst_96 = arith.constant dense<0.000000e+00> : vector<1xf32>
    %199 = vector.multi_reduction <add>, %198, %cst_96 [0] : vector<32x1xf32> to vector<1xf32>
    %200 = vector.shape_cast %199 : vector<1xf32> to vector<1x1xf32>
    %c4_i32_97 = arith.constant 4 : i32
    %201 = vector.broadcast %c4_i32_97 : i32 to vector<1x10xi32>
    %202 = arith.cmpi eq, %131, %201 : vector<1x10xi32>
    %cst_98 = arith.constant 0.000000e+00 : f32
    %203 = vector.shape_cast %200 : vector<1x1xf32> to vector<1x1xf32>
    %204 = vector.broadcast %203 : vector<1x1xf32> to vector<1x10xf32>
    %205 = vector.broadcast %cst_98 : f32 to vector<1x10xf32>
    %206 = arith.select %202, %204, %205 : vector<1x10xi1>, vector<1x10xf32>
    %207 = arith.addf %192, %206 : vector<1x10xf32>
    %c5_99 = arith.constant 5 : index
    %c0_100 = arith.constant 0 : index
    %c0_101 = arith.constant 0 : index
    %208 = vector.load %arg7[%c5_99, %c0_100, %c0_101] : memref<10x32x64xbf16, #tpu.memory_space<vmem>>, vector<1x32x64xbf16>
    %209 = vector.shape_cast %208 : vector<1x32x64xbf16> to vector<32x64xbf16>
    %210 = arith.extf %209 : vector<32x64xbf16> to vector<32x64xf32>
    %211 = arith.mulf %210, %130 : vector<32x64xf32>
    %cst_102 = arith.constant dense<0.000000e+00> : vector<32xf32>
    %212 = vector.multi_reduction <add>, %211, %cst_102 [1] : vector<32x64xf32> to vector<32xf32>
    %213 = vector.shape_cast %212 : vector<32xf32> to vector<32x1xf32>
    %cst_103 = arith.constant dense<0.000000e+00> : vector<1xf32>
    %214 = vector.multi_reduction <add>, %213, %cst_103 [0] : vector<32x1xf32> to vector<1xf32>
    %215 = vector.shape_cast %214 : vector<1xf32> to vector<1x1xf32>
    %c5_i32 = arith.constant 5 : i32
    %216 = vector.broadcast %c5_i32 : i32 to vector<1x10xi32>
    %217 = arith.cmpi eq, %131, %216 : vector<1x10xi32>
    %cst_104 = arith.constant 0.000000e+00 : f32
    %218 = vector.shape_cast %215 : vector<1x1xf32> to vector<1x1xf32>
    %219 = vector.broadcast %218 : vector<1x1xf32> to vector<1x10xf32>
    %220 = vector.broadcast %cst_104 : f32 to vector<1x10xf32>
    %221 = arith.select %217, %219, %220 : vector<1x10xi1>, vector<1x10xf32>
    %222 = arith.addf %207, %221 : vector<1x10xf32>
    %c6_105 = arith.constant 6 : index
    %c0_106 = arith.constant 0 : index
    %c0_107 = arith.constant 0 : index
    %223 = vector.load %arg7[%c6_105, %c0_106, %c0_107] : memref<10x32x64xbf16, #tpu.memory_space<vmem>>, vector<1x32x64xbf16>
    %224 = vector.shape_cast %223 : vector<1x32x64xbf16> to vector<32x64xbf16>
    %225 = arith.extf %224 : vector<32x64xbf16> to vector<32x64xf32>
    %226 = arith.mulf %225, %130 : vector<32x64xf32>
    %cst_108 = arith.constant dense<0.000000e+00> : vector<32xf32>
    %227 = vector.multi_reduction <add>, %226, %cst_108 [1] : vector<32x64xf32> to vector<32xf32>
    %228 = vector.shape_cast %227 : vector<32xf32> to vector<32x1xf32>
    %cst_109 = arith.constant dense<0.000000e+00> : vector<1xf32>
    %229 = vector.multi_reduction <add>, %228, %cst_109 [0] : vector<32x1xf32> to vector<1xf32>
    %230 = vector.shape_cast %229 : vector<1xf32> to vector<1x1xf32>
    %c6_i32 = arith.constant 6 : i32
    %231 = vector.broadcast %c6_i32 : i32 to vector<1x10xi32>
    %232 = arith.cmpi eq, %131, %231 : vector<1x10xi32>
    %cst_110 = arith.constant 0.000000e+00 : f32
    %233 = vector.shape_cast %230 : vector<1x1xf32> to vector<1x1xf32>
    %234 = vector.broadcast %233 : vector<1x1xf32> to vector<1x10xf32>
    %235 = vector.broadcast %cst_110 : f32 to vector<1x10xf32>
    %236 = arith.select %232, %234, %235 : vector<1x10xi1>, vector<1x10xf32>
    %237 = arith.addf %222, %236 : vector<1x10xf32>
    %c7_111 = arith.constant 7 : index
    %c0_112 = arith.constant 0 : index
    %c0_113 = arith.constant 0 : index
    %238 = vector.load %arg7[%c7_111, %c0_112, %c0_113] : memref<10x32x64xbf16, #tpu.memory_space<vmem>>, vector<1x32x64xbf16>
    %239 = vector.shape_cast %238 : vector<1x32x64xbf16> to vector<32x64xbf16>
    %240 = arith.extf %239 : vector<32x64xbf16> to vector<32x64xf32>
    %241 = arith.mulf %240, %130 : vector<32x64xf32>
    %cst_114 = arith.constant dense<0.000000e+00> : vector<32xf32>
    %242 = vector.multi_reduction <add>, %241, %cst_114 [1] : vector<32x64xf32> to vector<32xf32>
    %243 = vector.shape_cast %242 : vector<32xf32> to vector<32x1xf32>
    %cst_115 = arith.constant dense<0.000000e+00> : vector<1xf32>
    %244 = vector.multi_reduction <add>, %243, %cst_115 [0] : vector<32x1xf32> to vector<1xf32>
    %245 = vector.shape_cast %244 : vector<1xf32> to vector<1x1xf32>
    %c7_i32 = arith.constant 7 : i32
    %246 = vector.broadcast %c7_i32 : i32 to vector<1x10xi32>
    %247 = arith.cmpi eq, %131, %246 : vector<1x10xi32>
    %cst_116 = arith.constant 0.000000e+00 : f32
    %248 = vector.shape_cast %245 : vector<1x1xf32> to vector<1x1xf32>
    %249 = vector.broadcast %248 : vector<1x1xf32> to vector<1x10xf32>
    %250 = vector.broadcast %cst_116 : f32 to vector<1x10xf32>
    %251 = arith.select %247, %249, %250 : vector<1x10xi1>, vector<1x10xf32>
    %252 = arith.addf %237, %251 : vector<1x10xf32>
    %c8_117 = arith.constant 8 : index
    %c0_118 = arith.constant 0 : index
    %c0_119 = arith.constant 0 : index
    %253 = vector.load %arg7[%c8_117, %c0_118, %c0_119] : memref<10x32x64xbf16, #tpu.memory_space<vmem>>, vector<1x32x64xbf16>
    %254 = vector.shape_cast %253 : vector<1x32x64xbf16> to vector<32x64xbf16>
    %255 = arith.extf %254 : vector<32x64xbf16> to vector<32x64xf32>
    %256 = arith.mulf %255, %130 : vector<32x64xf32>
    %cst_120 = arith.constant dense<0.000000e+00> : vector<32xf32>
    %257 = vector.multi_reduction <add>, %256, %cst_120 [1] : vector<32x64xf32> to vector<32xf32>
    %258 = vector.shape_cast %257 : vector<32xf32> to vector<32x1xf32>
    %cst_121 = arith.constant dense<0.000000e+00> : vector<1xf32>
    %259 = vector.multi_reduction <add>, %258, %cst_121 [0] : vector<32x1xf32> to vector<1xf32>
    %260 = vector.shape_cast %259 : vector<1xf32> to vector<1x1xf32>
    %c8_i32 = arith.constant 8 : i32
    %261 = vector.broadcast %c8_i32 : i32 to vector<1x10xi32>
    %262 = arith.cmpi eq, %131, %261 : vector<1x10xi32>
    %cst_122 = arith.constant 0.000000e+00 : f32
    %263 = vector.shape_cast %260 : vector<1x1xf32> to vector<1x1xf32>
    %264 = vector.broadcast %263 : vector<1x1xf32> to vector<1x10xf32>
    %265 = vector.broadcast %cst_122 : f32 to vector<1x10xf32>
    %266 = arith.select %262, %264, %265 : vector<1x10xi1>, vector<1x10xf32>
    %267 = arith.addf %252, %266 : vector<1x10xf32>
    %c9 = arith.constant 9 : index
    %c0_123 = arith.constant 0 : index
    %c0_124 = arith.constant 0 : index
    %268 = vector.load %arg7[%c9, %c0_123, %c0_124] : memref<10x32x64xbf16, #tpu.memory_space<vmem>>, vector<1x32x64xbf16>
    %269 = vector.shape_cast %268 : vector<1x32x64xbf16> to vector<32x64xbf16>
    %270 = arith.extf %269 : vector<32x64xbf16> to vector<32x64xf32>
    %271 = arith.mulf %270, %130 : vector<32x64xf32>
    %cst_125 = arith.constant dense<0.000000e+00> : vector<32xf32>
    %272 = vector.multi_reduction <add>, %271, %cst_125 [1] : vector<32x64xf32> to vector<32xf32>
    %273 = vector.shape_cast %272 : vector<32xf32> to vector<32x1xf32>
    %cst_126 = arith.constant dense<0.000000e+00> : vector<1xf32>
    %274 = vector.multi_reduction <add>, %273, %cst_126 [0] : vector<32x1xf32> to vector<1xf32>
    %275 = vector.shape_cast %274 : vector<1xf32> to vector<1x1xf32>
    %c9_i32 = arith.constant 9 : i32
    %276 = vector.broadcast %c9_i32 : i32 to vector<1x10xi32>
    %277 = arith.cmpi eq, %131, %276 : vector<1x10xi32>
    %cst_127 = arith.constant 0.000000e+00 : f32
    %278 = vector.shape_cast %275 : vector<1x1xf32> to vector<1x1xf32>
    %279 = vector.broadcast %278 : vector<1x1xf32> to vector<1x10xf32>
    %280 = vector.broadcast %cst_127 : f32 to vector<1x10xf32>
    %281 = arith.select %277, %279, %280 : vector<1x10xi1>, vector<1x10xf32>
    %282 = arith.addf %267, %281 : vector<1x10xf32>
    %cst_128 = arith.constant dense<0xFF800000> : vector<1xf32>
    %283 = vector.multi_reduction <maximumf>, %282, %cst_128 [1] : vector<1x10xf32> to vector<1xf32>
    %284 = vector.shape_cast %283 : vector<1xf32> to vector<1x1xf32>
    %285 = vector.broadcast %284 : vector<1x1xf32> to vector<1x10xf32>
    %286 = arith.subf %282, %285 : vector<1x10xf32>
    %287 = math.exp %286 : vector<1x10xf32>
    %cst_129 = arith.constant dense<0.000000e+00> : vector<1xf32>
    %288 = vector.multi_reduction <add>, %287, %cst_129 [1] : vector<1x10xf32> to vector<1xf32>
    %289 = vector.shape_cast %288 : vector<1xf32> to vector<1x1xf32>
    %290 = vector.broadcast %289 : vector<1x1xf32> to vector<1x10xf32>
    %291 = arith.divf %287, %290 : vector<1x10xf32>
    %c0_130 = arith.constant 0 : index
    %c0_131 = arith.constant 0 : index
    %c0_132 = arith.constant 0 : index
    %292 = vector.load %arg9[%c0_130, %c0_131, %c0_132] : memref<1x1x10xf32, #tpu.memory_space<vmem>>, vector<1x1x10xf32>
    %293 = vector.shape_cast %292 : vector<1x1x10xf32> to vector<1x10xf32>
    %294 = vector.shape_cast %291 : vector<1x10xf32> to vector<1x1x10xf32>
    tpu.vector_store %arg9[%c0_130, %c0_131, %c0_132], %294 {strides = array<i32>} : memref<1x1x10xf32, #tpu.memory_space<vmem>>, vector<1x1x10xf32>,
    return
  }
  func.func @transform_0(%arg0: i32) -> (i32, i32, i32) {
    %c0_i32 = arith.constant 0 : i32
    %c0_i32_0 = arith.constant 0 : i32
    %c0_i32_1 = arith.constant 0 : i32
    return %arg0, %c0_i32, %c0_i32_0 : i32, i32, i32
  }
  func.func @transform_1(%arg0: i32) -> (i32, i32) {
    %c0_i32 = arith.constant 0 : i32
    %c0_i32_0 = arith.constant 0 : i32
    %c0_i32_1 = arith.constant 0 : i32
    return %c0_i32, %c0_i32_0 : i32, i32
  }
  func.func @transform_2(%arg0: i32) -> (i32, i32) {
    %c0_i32 = arith.constant 0 : i32
    %c0_i32_0 = arith.constant 0 : i32
    %c0_i32_1 = arith.constant 0 : i32
    return %c0_i32, %c0_i32_0 : i32, i32
  }
  func.func @transform_3(%arg0: i32) -> (i32, i32, i32) {
    %c0_i32 = arith.constant 0 : i32
    %c0_i32_0 = arith.constant 0 : i32
    %c0_i32_1 = arith.constant 0 : i32
    %c0_i32_2 = arith.constant 0 : i32
    return %c0_i32, %c0_i32_0, %c0_i32_1 : i32, i32, i32
  }
  func.func @transform_4(%arg0: i32) -> (i32, i32) {
    %c0_i32 = arith.constant 0 : i32
    %c0_i32_0 = arith.constant 0 : i32
    %c0_i32_1 = arith.constant 0 : i32
    return %c0_i32, %c0_i32_0 : i32, i32
  }
  func.func @transform_5(%arg0: i32) -> (i32, i32) {
    %c0_i32 = arith.constant 0 : i32
    %c0_i32_0 = arith.constant 0 : i32
    %c0_i32_1 = arith.constant 0 : i32
    return %c0_i32, %c0_i32_0 : i32, i32
  }
  func.func @transform_6(%arg0: i32) -> (i32, i32, i32) {
    %c0_i32 = arith.constant 0 : i32
    %c0_i32_0 = arith.constant 0 : i32
    %c0_i32_1 = arith.constant 0 : i32
    %c0_i32_2 = arith.constant 0 : i32
    return %c0_i32, %c0_i32_0, %c0_i32_1 : i32, i32, i32
  }
  func.func @transform_7(%arg0: i32) -> (i32, i32) {
    %c0_i32 = arith.constant 0 : i32
    %c0_i32_0 = arith.constant 0 : i32
    %c0_i32_1 = arith.constant 0 : i32
    return %c0_i32, %c0_i32_0 : i32, i32
  }
  func.func @transform_8(%arg0: i32) -> (i32, i32, i32) {
    %c0_i32 = arith.constant 0 : i32
    %c0_i32_0 = arith.constant 0 : i32
    %c0_i32_1 = arith.constant 0 : i32
    return %arg0, %c0_i32, %c0_i32_0 : i32, i32, i32
  }
}

</mosaic_0001>

<bundles_post_ra>
// kernel: simple_cnn_forward.1
= control target key start
LH: loop header
LB: loop body
LE: loop exit
PB: predicated region body
PF: predicated region fallthrough
CT: control target
= control target key end

     0   :  { %13 = vsyncpa [#allocation3], 0  ;;  %s3685_s0 = inlined_call_operand.vmem [shape: bf16[2,32,1024], index: 0, kind: input, shape index: {}]   ;;  %s3686_s1 = inlined_call_operand.vmem [shape: bf16[16,32], index: 1, kind: input, shape index: {}]   ;;  %s3687_s2 = inlined_call_operand.vmem [shape: f32[16,1], index: 2, kind: input, shape index: {}]   ;;  %s3688_s3 = inlined_call_operand.vmem [shape: bf16[9,32,16], index: 3, kind: input, shape index: {}]   ;;  %s3689_s4 = inlined_call_operand.vmem [shape: f32[32,1], index: 4, kind: input, shape index: {}]   ;;  %s3690_s5 = inlined_call_operand.vmem [shape: bf16[256,64], index: 5, kind: input, shape index: {}]   ;;  %s3691_s6 = inlined_call_operand.vmem [shape: bf16[10,32,64], index: 6, kind: input, shape index: {}]   ;;  %s3692_s7 = inlined_call_operand.vmem [shape: f32[1,10], index: 7, kind: input, shape index: {}]   ;;  %s3693_s8 = inlined_call_operand.hbm [shape: f32[2,1,10], index: 8, kind: output, shape index: {}]  }
   0x1   :  { %15 = vsyncpa [#allocation3 + $0x1], 0  ;;  %s2891_s27 = smov 0   ;;  %s2893_s28 = smov 0  }
   0x2   :  { %s2895_s29 = smov 0   ;;  %s2897_s30 = smov 0  }
   0x3 LB: > { %s2912_s9 = sadd.s32 4294967295, %s2834_s30   ;;  %s2239_s10 = sadd.s32 4294967294, %s2834_s30   ;;  %s2834_s30 = sphi %s2897_s30, %s3739_s30   ;;  %s2830_s29 = sphi %s2895_s29, %s3738_s29   ;;  %s2826_s28 = sphi %s2893_s28, %s3737_s28   ;;  %s2822_s27 = sphi %s2891_s27, %s3736_s27  }
   0x4   : > { %s2916_s11 = sadd.s32 1, %s2834_s30   ;;  %s201_s12 = sadd.s32 1, %s2830_s29 }
   0x5   : > { %s198_s13 = ssub.s32 %s2834_s30, %s2916_s11  ;;  %p211_p0 = scmp.ne.s32.totalorder %s2830_s29, %s2826_s28 }
   0x6   : > { %p199_p1 = scmp.eq.s32.totalorder %s198_s13, 0  ;;  %p212_p2 = scmp.eq.s32.totalorder %s2912_s9, 1 }
   0x7   : > { %p217_p3 = scmp.ne.s32.totalorder %s2826_s28, %s2822_s27  ;;  %p218_p4 = scmp.eq.s32.totalorder %s2239_s10, 1 }
   0x8   : > { %s2927_s14 = scalar_select %p199_p1, %s2830_s29, %s201_s12  }
   0x9   : > { %p2929_p5 = por %p212_p2, %p211_p0  ;;  %p2933_p6 = por %p218_p4, %p217_p3 }
   0xa   : > { %p2242_p7 = scmp.ge.s32.totalorder %s2834_s30, 1  ;;  %p265_p8 = scmp.lt.s32.totalorder %s2834_s30, 3 }
   0xc   : > { %p266_p9 = pnand %p2242_p7, %p265_p8 }
   0xe   : > { %269 = sbr.rel (%p266_p9) target bundleno = 1664 (0x680), region = 52 }
  0x13   : > { %p298_p10 = scmp.lt.s32.totalorder %s2912_s9, 1  ;;  %v2836_v0 = vmov 0   ;;  %v595_v1 = vld [vmem:[%s3687_s2] sm:$0xff]  ;;  %v596_v2 = vld [vmem:[%s3687_s2 + $0x8] sm:$0xff]  ;;  %vm407_vm0 = vcmask 261120   ;;  %s2837_s12 = smov 17  }
  0x14   : > { %443 = vmatprep.mubr.bf16.mxu0 %v2836_v0  ;;  %572 = vmatprep.mubr.bf16.mxu1 %v2836_v0  ;;  %v2735_v20 = vld [vmem:[%s3686_s1] sm:$0xff]   ;;  %s2838_s13 = smov 16   ;;  %s2839_s17 = smov 15   ;;  %vm685_vm12 = vcmask 130048  }
  0x15   : > { %s299_s19 = scalar_select %p298_p10, %s2912_s9, 1  ;;  %2613 = vset.pattern.permute.xlu0 %v2836_v0  ;;  %2734 = vset.pattern.permute.xlu1 %v2836_v0 }
  0x16   : > { %599 = vperm.xlu0 %2613, %v595_v1   ;;  %s2840_s18 = smov 1   ;;  %s2843_s21 = smov 112  }
  0x17   : > { %s2437_s20 = sshll.u32 %s299_s19, 7  ;;  %s2841_s19 = smov 127  }
  0x18   : > { %s2954_s25 = scalar_lea.vmem %s3685_s0, %s2437_s20  ;;  %s2842_s20 = smov 113  }
  0x19   : > { %v314_v3 = vld [vmem:[%s2954_s25 + $0x40] sm:$0xff]  ;;  %v315_v10 = vld [vmem:[%s2954_s25 + $0x48] sm:$0xff]  ;;  %v317_v12 = vld [vmem:[%s2954_s25 + $0x58] sm:$0xff]  ;;  %s2844_s22 = smov 111  }
  0x1a   : > { %v318_v4 = vld [vmem:[%s2954_s25 + $0x60] sm:$0xff]  ;;  %604 = vperm.xlu0 %2613, %v596_v2   ;;  %v319_v11 = vld [vmem:[%s2954_s25 + $0x68] sm:$0xff]  ;;  %v321_v13 = vld [vmem:[%s2954_s25 + $0x78] sm:$0xff] }
  0x1b   : > { %v306_v5 = vld [vmem:[%s2954_s25] sm:$0xff]  ;;  %v2255_v6 = vcombine.high %v314_v3, %v318_v4  ;;  %v2254_v7 = vcombine.low %v314_v3, %v318_v4  ;;  %v307_v15 = vld [vmem:[%s2954_s25 + $0x8] sm:$0xff]  ;;  %v2261_v16 = vcombine.high %v317_v12, %v321_v13  ;;  %v2260_v17 = vcombine.low %v317_v12, %v321_v13  ;;  %v309_v18 = vld [vmem:[%s2954_s25 + $0x18] sm:$0xff] }
  0x1c   : > { %v310_v8 = vld [vmem:[%s2954_s25 + $0x20] sm:$0xff]  ;;  %v313_v19 = vld [vmem:[%s2954_s25 + $0x38] sm:$0xff]  ;;  %v2257_v21 = vcombine.high %v315_v10, %v319_v11  ;;  %v311_v22 = vld [vmem:[%s2954_s25 + $0x28] sm:$0xff]  ;;  %v2256_v25 = vcombine.low %v315_v10, %v319_v11 }
  0x1d   : > { %v2247_v9 = vcombine.high %v306_v5, %v310_v8  ;;  %423 = vmatprep.subr.bf16.mxu0 %v2255_v6  ;;  %v2246_v14 = vcombine.low %v306_v5, %v310_v8  ;;  %v2253_v23 = vcombine.high %v309_v18, %v313_v19  ;;  %552 = vmatprep.subr.bf16.mxu1 %v2261_v16  ;;  %v316_v26 = vld [vmem:[%s2954_s25 + $0x50] sm:$0xff] }
  0x1e   : > { %424 = vmatpush1.bf16.msra.mxu0 %v2254_v7  ;;  %553 = vmatpush1.bf16.msra.mxu1 %v2260_v17  ;;  %v2252_v24 = vcombine.low %v309_v18, %v313_v19  ;;  %v320_v27 = vld [vmem:[%s2954_s25 + $0x70] sm:$0xff]  ;;  %v2249_v28 = vcombine.high %v307_v15, %v311_v22  ;;  %v2248_v29 = vcombine.low %v307_v15, %v311_v22  ;;  %v615_v15 = vlaneseq }
  0x1f   : > { %425 = vmatprep.subr.bf16.mxu0 %v2247_v9  ;;  %554 = vmatprep.subr.bf16.mxu1 %v2253_v23  ;;  %v308_v30 = vld [vmem:[%s2954_s25 + $0x10] sm:$0xff]  ;;  %v2259_v32 = vcombine.high %v316_v26, %v320_v27  ;;  %v2258_v33 = vcombine.low %v316_v26, %v320_v27 }
  0x20   : > { %v312_v31 = vld [vmem:[%s2954_s25 + $0x30] sm:$0xff]  ;;  %v2991_v16 = vand.u32 127, %v615_v15 }
  0x21   : > { %v2251_v34 = vcombine.high %v308_v30, %v312_v31  ;;  %v2250_v35 = vcombine.low %v308_v30, %v312_v31 }
  0x22   : > { %426 = vmatpush1.bf16.msra.mxu0 %v2246_v14  ;;  %555 = vmatpush1.bf16.msra.mxu1 %v2252_v24  ;;  %3698 = vst [vmem:[#allocation5_spill] sm:$0xff] %v2991_v16  ;;  %v2994_v17 = vadd.s32 128, %v2991_v16  ;;  %v618_v19 = vshra.s32 %v2991_v16, 4  ;;  %v620_v23 = vand.u32 15, %v2991_v16  ;;  %vm659_vm3 = vcmp.lt.s32.totalorder %v2991_v16, 16 }
  0x23   : > { %466 = vmatprep.subr.bf16.mxu0 %v2257_v21  ;;  %vm630_vm9 = vcmp.lt.s32.totalorder %v2991_v16, 17 }
  0x24   : > { %v619_v18 = vshra.s32 %v2994_v17, 4  ;;  %v621_v22 = vand.u32 15, %v2994_v17  ;;  %vm3008_vm2 = vcmp.ge.s32.totalorder %v618_v19, 1  ;;  %vm3017_vm5 = vcmp.ge.s32.totalorder %v620_v23, 1  ;;  %v2740_v17 = vld [vmem:[%s3688_s3 + $0x20] sm:$0xff]  }
  0x25   : > { %2262 = vmatmul.mubr.msk.bf16.vlgmr.msra.gmra.mxu0 %vm407_vm0, %v2735_v20  ;;  %2265 = vmatmul.mubr.msk.bf16.vlgmr.msra.gmra.mxu1 %vm407_vm0, %v2735_v20  ;;  %vm2275_vm7 = vmpackc.low %vm3008_vm2, %vm3008_vm2  ;;  %vm3052_vm14 = vcmp.lt.s32.totalorder %v620_v23, 15 }
  0x26   : > { %467 = vmatpush1.bf16.msra.mxu0 %v2256_v25  ;;  %486 = vmatprep.mubr.bf16.mxu0 %v2836_v0  ;;  %vm3002_vm1 = vcmp.ge.s32.totalorder %v619_v18, 1  ;;  %vm3013_vm4 = vcmp.ge.s32.totalorder %v621_v22, 1  ;;  %vm639_vm10 = vmand %vm3008_vm2, %vm3017_vm5  ;;  %vm3036_vm11 = vcmp.lt.s32.totalorder %v621_v22, 15 }
  0x27   : > { %468 = vmatprep.subr.bf16.mxu0 %v2249_v28  ;;  %793 = vmatprep.mubr.bf16.mxu1 %v2836_v0  ;;  %vm2272_vm6 = vmpackc.low %vm3002_vm1, %vm3002_vm1 }
  0x28   : > { %vm640_vm8 = vmand %vm3002_vm1, %vm3013_vm4 }
  0x29   : > { %vm3048_vm13 = vmpackc.low %vm640_vm8, %vm640_vm8 }
  0x2a   : > { %469 = vmatpush1.bf16.msra.mxu0 %v2248_v29  ;;  %vm3075_vm15 = vmpackc.low %vm639_vm10, %vm639_vm10 }
  0x2b   : > { %509 = vmatprep.subr.bf16.mxu0 %v2259_v32  ;;  %vm2310_vm8 = vmpackc.low %vm3013_vm4, %vm3013_vm4 }
  0x2c   : > { %vm2313_vm10 = vmpackc.low %vm3017_vm5, %vm3017_vm5 }
  0x2d   : > { %2263 = vmatmul.mubr.msk.bf16.vlgmr.msra.gmra.mxu0 %vm407_vm0, %v2735_v20 }
  0x2e   : > { %510 = vmatpush1.bf16.msra.mxu0 %v2258_v33  ;;  %529 = vmatprep.mubr.bf16.mxu0 %v2836_v0 }
  0x2f   : > { %511 = vmatprep.subr.bf16.mxu0 %v2251_v34 }
  0x32   : > { %512 = vmatpush1.bf16.msra.mxu0 %v2250_v35 }
  0x35   : > { %2264 = vmatmul.mubr.msk.bf16.vlgmr.msra.gmra.mxu0 %vm407_vm0, %v2735_v20  ;;  %vm822_vm0 = vcmp.lt.s32.totalorder %v2991_v16, 15 }
  0x36   : > { %724 = vmatprep.mubr.bf16.mxu0 %v2836_v0 }
  0x91   : > { %v600_v50 = vpop.permute.xlu0 %599 }
  0x95   : > { %v605_v2 = vpop.permute.xlu0 %604 }
  0xe5   : > { %v445_v36 = vpop.f32.mrf.mxu0  ;;  %v574_v43 = vpop.f32.mrf.mxu1 }
  0xe7   : > { %v447_v37 = vpop.f32.mrf.mxu0  ;;  %v576_v46 = vpop.f32.mrf.mxu1 }
  0xe9   : > { %v449_v38 = vpop.f32.mrf.mxu0  ;;  %v578_v55 = vpop.f32.mrf.mxu1 }
  0xeb   : > { %v451_v39 = vpop.f32.mrf.mxu0  ;;  %v580_v1 = vpop.f32.mrf.mxu1 }
  0xed   : > { %v488_v40 = vpop.f32.mrf.mxu0 }
  0xee   : > { %v583_v45 = vmax.f32 %v445_v36, %v488_v40 }
  0xef   : > { %v490_v41 = vpop.f32.mrf.mxu0 }
  0xf0   : > { %v584_v48 = vmax.f32 %v447_v37, %v490_v41 }
  0xf1   : > { %v492_v42 = vpop.f32.mrf.mxu0 }
  0xf2   : > { %v585_v52 = vmax.f32 %v449_v38, %v492_v42 }
  0xf3   : > { %v494_v44 = vpop.f32.mrf.mxu0 }
  0xf4   : > { %v586_v57 = vmax.f32 %v451_v39, %v494_v44 }
  0xf5   : > { %v531_v47 = vpop.f32.mrf.mxu0 }
  0xf6   : > { %v587_v49 = vmax.f32 %v583_v45, %v531_v47  ;;  %v2736_v47 = vld [vmem:[%s3688_s3 + $0x10] sm:$0xff]  }
  0xf7   : > { %v533_v51 = vpop.f32.mrf.mxu0 }
  0xf8   : > { %v591_v53 = vmax.f32 %v587_v49, %v574_v43  ;;  %v588_v54 = vmax.f32 %v584_v48, %v533_v51  ;;  %v2749_v49 = vld [vmem:[%s3688_s3 + $0x70] sm:$0xff]  }
  0xf9   : > { %v535_v56 = vpop.f32.mrf.mxu0 }
  0xfa   : > { %v589_v58 = vmax.f32 %v585_v52, %v535_v56  ;;  %v607_v60 = vadd.f32 %v600_v50, %v591_v53  ;;  %v592_v61 = vmax.f32 %v588_v54, %v576_v46 }
  0xfb   : > { %v537_v59 = vpop.f32.mrf.mxu0 }
  0xfc   : > { %v593_v62 = vmax.f32 %v589_v58, %v578_v55  ;;  %v590_v63 = vmax.f32 %v586_v57, %v537_v59  ;;  %v611_v5 = vmax.f32 %v607_v60, 0.0  ;;  %v608_v6 = vadd.f32 %v600_v50, %v592_v61 }
  0xfe   : > { %v609_v3 = vadd.f32 %v605_v2, %v593_v62  ;;  %v594_v4 = vmax.f32 %v590_v63, %v580_v1  ;;  %v612_v11 = vmax.f32 %v608_v6, 0.0  ;;  %v2737_v63 = vld [vmem:[%s3688_s3] sm:$0xff]  }
 0x100   : > { %v613_v7 = vmax.f32 %v609_v3, 0.0  ;;  %v610_v8 = vadd.f32 %v605_v2, %v594_v4 }
 0x102   : > { %v614_v9 = vmax.f32 %v610_v8, 0.0  ;;  %v2624_v10 = vpack.i.bf16 %v613_v7, %v611_v5  ;;  %v2985_v14 = vpack.c.bf16 %v613_v7, %v611_v5 }
 0x104   : > { %2625 = vrot.lane.b32.xlu0 %v2624_v10, %s2837_s12  ;;  %2615 = vrot.lane.b32.xlu1 %v2624_v10, %s2838_s13  ;;  %v2619_v12 = vpack.i.bf16 %v614_v9, %v612_v11  ;;  %v2983_v13 = vpack.c.bf16 %v614_v9, %v612_v11 }
 0x108   : > { %2630 = vrot.lane.b32.xlu0 %v2624_v10, %s2839_s17  ;;  %2620 = vrot.lane.b32.xlu1 %v2619_v12, %s2838_s13  ;;  %s2845_s13 = smov [#allocation2]  }
 0x10c   : > { %2645 = vrot.lane.b32.xlu0 %v2624_v10, %s2840_s18  ;;  %2635 = vrot.lane.b32.xlu1 %v2619_v12, %s2837_s12 }
 0x110   : > { %2655 = vrot.lane.b32.xlu0 %v2624_v10, %s2841_s19  ;;  %2640 = vrot.lane.b32.xlu1 %v2619_v12, %s2839_s17 }
 0x114   : > { %2660 = vrot.lane.b32.xlu0 %v2624_v10, %s2842_s20  ;;  %2650 = vrot.lane.b32.xlu1 %v2619_v12, %s2840_s18 }
 0x118   : > { %2675 = vrot.lane.b32.xlu0 %v2624_v10, %s2843_s21  ;;  %2665 = vrot.lane.b32.xlu1 %v2619_v12, %s2841_s19 }
 0x11c   : > { %2680 = vrot.lane.b32.xlu0 %v2624_v10, %s2844_s22  ;;  %2670 = vrot.lane.b32.xlu1 %v2619_v12, %s2842_s20  ;;  %s296_s20 = sand.u32 1, %s2826_s28  }
 0x11d   : > { %s2172_s10 = scalar_lea.sflag [#allocation3], %s296_s20 }
 0x120   : > { %2685 = vrot.lane.b32.xlu1 %v2619_v12, %s2843_s21 }
 0x124   : > { %2690 = vrot.lane.b32.xlu1 %v2619_v12, %s2844_s22  ;;  %v2738_v12 = vld [vmem:[%s3688_s3 + $0x18] sm:$0xff]   ;;  %s2434_s22 = sshll.u32 %s2912_s9, 4 }
 0x125   : > { %s2182_s26 = scalar_lea.hbm %s3693_s8, %s2434_s22 }
 0x176   : > { %v2626_v20 = vpop.permute.xlu0 %2625  ;;  %v2616_v21 = vpop.permute.xlu1 %2615 }
 0x177   : > { %v2618_v30 = vunpack.i.h.bf16 %v2616_v21  ;;  %v2617_v31 = vunpack.i.l.bf16 %v2616_v21  ;;  %v2628_v43 = vunpack.i.h.bf16 %v2626_v20  ;;  %v2627_v44 = vunpack.i.l.bf16 %v2626_v20 }
 0x17a   : > { %v2631_v26 = vpop.permute.xlu0 %2630  ;;  %v2621_v27 = vpop.permute.xlu1 %2620 }
 0x17b   : > { %v2623_v32 = vunpack.i.h.bf16 %v2621_v27  ;;  %v2622_v33 = vunpack.i.l.bf16 %v2621_v27  ;;  %v2633_v58 = vunpack.i.h.bf16 %v2631_v26  ;;  %v2632_v59 = vunpack.i.l.bf16 %v2631_v26 }
 0x17d   : > { %v661_v34 = vsel %vm659_vm3, %v2618_v30, %v2623_v32  ;;  %v663_v35 = vsel %vm659_vm3, %v2623_v32, %v2618_v30  ;;  %v660_v36 = vsel %vm659_vm3, %v2617_v31, %v2622_v33  ;;  %v662_v37 = vsel %vm659_vm3, %v2622_v33, %v2617_v31  ;;  %vm830_vm3 = vmand %vm3002_vm1, %vm3036_vm11  ;;  %v2739_v33 = vld [vmem:[%s3688_s3 + $0x8] sm:$0xff]  }
 0x17e   : > { %v2273_v38 = vpack.c.bf16 %v661_v34, %v660_v36  ;;  %v2276_v39 = vpack.c.bf16 %v663_v35, %v662_v37  ;;  %v2646_v40 = vpop.permute.xlu0 %2645  ;;  %v2636_v41 = vpop.permute.xlu1 %2635  ;;  %vm2296_vm1 = vmpackc.low %vm830_vm3, %vm830_vm3 }
 0x17f   : > { %v2638_v45 = vunpack.i.h.bf16 %v2636_v41  ;;  %v2637_v46 = vunpack.i.l.bf16 %v2636_v41  ;;  %v2648_v8 = vunpack.i.h.bf16 %v2646_v40  ;;  %v2647_v9 = vunpack.i.l.bf16 %v2646_v40 }
 0x180   : > { %2274 = vmatprep.subr.msk.bf16.mxu0 %vm2272_vm6, %v2273_v38  ;;  %vm829_vm6 = vmand %vm3008_vm2, %vm3052_vm14  ;;  %vm927_vm2 = vcmp.lt.s32.totalorder %v2991_v16, 1 }
 0x181   : > { %v632_v50 = vsel %vm630_vm9, %v2628_v43, %v2638_v45  ;;  %v634_v51 = vsel %vm630_vm9, %v2638_v45, %v2628_v43  ;;  %v631_v52 = vsel %vm630_vm9, %v2627_v44, %v2637_v46  ;;  %v633_v53 = vsel %vm630_vm9, %v2637_v46, %v2627_v44  ;;  %2277 = vmatpush1.bf16.msk.msra.mxu0 %vm2275_vm7, %v2276_v39  ;;  %vm2299_vm7 = vmpackc.low %vm829_vm6, %vm829_vm6 }
 0x182   : > { %v2283_v55 = vpack.c.bf16 %v632_v50, %v631_v52  ;;  %v2286_v56 = vpack.c.bf16 %v634_v51, %v633_v53  ;;  %v2641_v57 = vpop.permute.xlu1 %2640  ;;  %v3088_v62 = vpop.permute.xlu0 %2655  ;;  %vm1112_vm9 = vcmp.lt.s32.totalorder %v2991_v16, 127  ;;  %vm1318_vm6 = vcmp.lt.s32.totalorder %v2991_v16, 112  ;;  %v2741_v53 = vld [vmem:[%s3688_s3 + $0x30] sm:$0xff]  }
 0x183   : > { %v2643_v60 = vunpack.i.h.bf16 %v2641_v57  ;;  %v2642_v61 = vunpack.i.l.bf16 %v2641_v57  ;;  %v2658_v27 = vunpack.i.h.bf16 %v3088_v62  ;;  %v2657_v30 = vunpack.i.l.bf16 %v3088_v62 }
 0x184   : > { %2278 = vmatmul.mubr.msk.bf16.vlgmr.msra.gmra.mxu0 %vm685_vm12, %v2736_v47  ;;  %2284 = vmatprep.subr.msk.bf16.mxu1 %vm3048_vm13, %v2283_v55  ;;  %vm2332_vm13 = vmpackc.low %vm3036_vm11, %vm3036_vm11 }
 0x185   : > { %v824_v1 = vsel %vm822_vm0, %v2633_v58, %v2643_v60  ;;  %v826_v2 = vsel %vm822_vm0, %v2643_v60, %v2633_v58  ;;  %v823_v3 = vsel %vm822_vm0, %v2632_v59, %v2642_v61  ;;  %v825_v4 = vsel %vm822_vm0, %v2642_v61, %v2632_v59  ;;  %2287 = vmatpush1.bf16.msk.msra.mxu1 %vm3075_vm15, %v2286_v56  ;;  %v2742_v58 = vld [vmem:[%s3688_s3 + $0x28] sm:$0xff]   ;;  %v2743_v60 = vld [vmem:[%s3688_s3 + $0x38] sm:$0xff]  }
 0x186   : > { %v2297_v5 = vpack.c.bf16 %v824_v1, %v823_v3  ;;  %v2300_v6 = vpack.c.bf16 %v826_v2, %v825_v4  ;;  %v2651_v7 = vpop.permute.xlu1 %2650  ;;  %734 = vmatprep.mubr.bf16.mxu0 %v2836_v0  ;;  %v3107_v23 = vpop.permute.xlu0 %2660  ;;  %vm3130_vm15 = vcmp.lt.s32.totalorder %v619_v18, 15  ;;  %vm1213_vm0 = vcmp.lt.s32.totalorder %v2991_v16, 113  ;;  %v2744_v4 = vld [vmem:[%s3688_s3 + $0x40] sm:$0xff]  }
 0x187   : > { %v2653_v10 = vunpack.i.h.bf16 %v2651_v7  ;;  %v2652_v11 = vunpack.i.l.bf16 %v2651_v7  ;;  %v2663_v38 = vunpack.i.h.bf16 %v3107_v23  ;;  %v2662_v39 = vunpack.i.l.bf16 %v3107_v23  ;;  %vm1221_vm3 = vmand %vm3130_vm15, %vm3013_vm4  ;;  %v2750_v23 = vld [vmem:[%s3688_s3 + $0x68] sm:$0xff]  }
 0x188   : > { %2288 = vmatmul.mubr.msk.bf16.vlgmr.msra.gmra.mxu1 %vm685_vm12, %v2737_v63  ;;  %2298 = vmatprep.subr.msk.bf16.mxu0 %vm2296_vm1, %v2297_v5  ;;  %vm2346_vm1 = vmpackc.low %vm1221_vm3, %vm1221_vm3 }
 0x189   : > { %v929_v15 = vsel %vm927_vm2, %v2648_v8, %v2653_v10  ;;  %v931_v20 = vsel %vm927_vm2, %v2653_v10, %v2648_v8  ;;  %v928_v21 = vsel %vm927_vm2, %v2647_v9, %v2652_v11  ;;  %v930_v22 = vsel %vm927_vm2, %v2652_v11, %v2647_v9  ;;  %2301 = vmatpush1.bf16.msk.msra.mxu0 %vm2299_vm7, %v2300_v6  ;;  %vm2335_vm4 = vmpackc.low %vm3052_vm14, %vm3052_vm14  ;;  %v2745_v9 = vld [vmem:[%s3688_s3 + $0x50] sm:$0xff]   ;;  %v2746_v11 = vld [vmem:[%s3688_s3 + $0x48] sm:$0xff]  }
 0x18a   : > { %v2311_v24 = vpack.c.bf16 %v929_v15, %v928_v21  ;;  %v2314_v25 = vpack.c.bf16 %v931_v20, %v930_v22  ;;  %v2666_v26 = vpop.permute.xlu1 %2665  ;;  %1057 = vmatprep.subr.bf16.mxu0 %v2983_v13  ;;  %803 = vmatprep.mubr.bf16.mxu1 %v2836_v0  ;;  %v2676_v43 = vpop.permute.xlu0 %2675  ;;  %vm2360_vm2 = vmpackc.low %vm3130_vm15, %vm3130_vm15  ;;  %vm3183_vm7 = vcmp.lt.s32.totalorder %v618_v19, 15  ;;  %v2748_v21 = vld [vmem:[%s3688_s3 + $0x60] sm:$0xff]  }
 0x18b   : > { %v2668_v31 = vunpack.i.h.bf16 %v2666_v26  ;;  %v2667_v32 = vunpack.i.l.bf16 %v2666_v26  ;;  %v2678_v47 = vunpack.i.h.bf16 %v2676_v43  ;;  %v2677_v48 = vunpack.i.l.bf16 %v2676_v43  ;;  %v2753_v26 = vld [vmem:[%s3688_s3 + $0x88] sm:$0xff]  }
 0x18c   : > { %2279 = vmatmul.mubr.msk.bf16.gmra.mxu0 %vm685_vm12, %v2738_v12  ;;  %2312 = vmatprep.subr.msk.bf16.mxu1 %vm2310_vm8, %v2311_v24  ;;  %vm1419_vm8 = vcmp.lt.s32.totalorder %v2991_v16, 111  ;;  %v2747_v12 = vld [vmem:[%s3688_s3 + $0x58] sm:$0xff]  }
 0x18d   : > { %v1116_v13 = vsel %vm1112_vm9, %v2668_v31, %v2658_v27  ;;  %v1115_v34 = vsel %vm1112_vm9, %v2667_v32, %v2657_v30  ;;  %2315 = vmatpush1.bf16.msk.msra.mxu1 %vm2313_vm10, %v2314_v25  ;;  %890 = vmatprep.mubr.bf16.mxu0 %v2836_v0  ;;  %v1114_v28 = vsel %vm1112_vm9, %v2658_v27, %v2668_v31  ;;  %vm1220_vm10 = vmand %vm3183_vm7, %vm3017_vm5  ;;  %v2751_v24 = vld [vmem:[%s3688_s3 + $0x78] sm:$0xff]   ;;  %v2752_v25 = vld [vmem:[%s3688_s3 + $0x80] sm:$0xff]  }
 0x18e   : > { %v2333_v36 = vpack.c.bf16 %v1116_v13, %v1115_v34  ;;  %v2671_v37 = vpop.permute.xlu1 %2670  ;;  %v1113_v52 = vsel %vm1112_vm9, %v2657_v30, %v2667_v32  ;;  %v2681_v59 = vpop.permute.xlu0 %2680  ;;  %vm2349_vm5 = vmpackc.low %vm1220_vm10, %vm1220_vm10 }
 0x18f   : > { %v2673_v40 = vunpack.i.h.bf16 %v2671_v37  ;;  %v2672_v41 = vunpack.i.l.bf16 %v2671_v37  ;;  %v2336_v57 = vpack.c.bf16 %v1114_v28, %v1113_v52  ;;  %v2683_v1 = vunpack.i.h.bf16 %v2681_v59 }
 0x190   : > { %2289 = vmatmul.mubr.msk.bf16.gmra.mxu1 %vm685_vm12, %v2739_v33  ;;  %2334 = vmatprep.subr.msk.bf16.mxu1 %vm2332_vm13, %v2333_v36  ;;  %v2682_v2 = vunpack.i.l.bf16 %v2681_v59  ;;  %vm1425_vm13 = vmand %vm3130_vm15, %vm3036_vm11 }
 0x191   : > { %v1217_v18 = vsel %vm1213_vm0, %v2673_v40, %v2663_v38  ;;  %v1216_v44 = vsel %vm1213_vm0, %v2672_v41, %v2662_v39  ;;  %991 = vmatprep.mubr.bf16.mxu1 %v2836_v0  ;;  %v1215_v3 = vsel %vm1213_vm0, %v2663_v38, %v2673_v40  ;;  %v1214_v19 = vsel %vm1213_vm0, %v2662_v39, %v2672_v41  ;;  %vm2374_vm0 = vmpackc.low %vm1425_vm13, %vm1425_vm13 }
 0x192   : > { %v2347_v45 = vpack.c.bf16 %v1217_v18, %v1216_v44  ;;  %v2686_v46 = vpop.permute.xlu1 %2685  ;;  %v2350_v6 = vpack.c.bf16 %v1215_v3, %v1214_v19  ;;  %vm2363_vm11 = vmpackc.low %vm3183_vm7, %vm3183_vm7 }
 0x193   : > { %v2688_v50 = vunpack.i.h.bf16 %v2686_v46  ;;  %v2687_v51 = vunpack.i.l.bf16 %v2686_v46  ;;  %vm1424_vm15 = vmand %vm3183_vm7, %vm3052_vm14 }
 0x194   : > { %2302 = vmatmul.mubr.msk.bf16.vlgmr.msra.gmra.mxu0 %vm685_vm12, %v2740_v17  ;;  %vm2377_vm3 = vmpackc.low %vm1424_vm15, %vm1424_vm15 }
 0x195   : > { %v1322_v54 = vsel %vm1318_vm6, %v2688_v50, %v2678_v47  ;;  %v1321_v55 = vsel %vm1318_vm6, %v2687_v51, %v2677_v48  ;;  %1058 = vmatpush1.bf16.msra.mxu0 %v2985_v14  ;;  %900 = vmatprep.mubr.bf16.mxu0 %v2836_v0  ;;  %v1320_v7 = vsel %vm1318_vm6, %v2678_v47, %v2688_v50 }
 0x196   : > { %v2361_v56 = vpack.c.bf16 %v1322_v54, %v1321_v55  ;;  %2348 = vmatprep.subr.msk.bf16.mxu0 %vm2346_vm1, %v2347_v45  ;;  %v2691_v14 = vpop.permute.xlu1 %2690  ;;  %v1319_v42 = vsel %vm1318_vm6, %v2677_v48, %v2687_v51 }
 0x197   : > { %v2693_v62 = vunpack.i.h.bf16 %v2691_v14  ;;  %v2692_v63 = vunpack.i.l.bf16 %v2691_v14  ;;  %v2364_v10 = vpack.c.bf16 %v1320_v7, %v1319_v42 }
 0x198   : > { %2316 = vmatmul.mubr.msk.bf16.vlgmr.msra.gmra.mxu1 %vm685_vm12, %v2741_v53 }
 0x199   : > { %2337 = vmatpush1.bf16.msk.msra.mxu1 %vm2335_vm4, %v2336_v57  ;;  %1001 = vmatprep.mubr.bf16.mxu1 %v2836_v0  ;;  %v1423_v29 = vsel %vm1419_vm8, %v2693_v62, %v2683_v1  ;;  %v1422_v5 = vsel %vm1419_vm8, %v2692_v63, %v2682_v2  ;;  %v1421_v15 = vsel %vm1419_vm8, %v2683_v1, %v2693_v62 }
 0x19a   : > { %2362 = vmatprep.subr.msk.bf16.mxu1 %vm2360_vm2, %v2361_v56  ;;  %v2375_v8 = vpack.c.bf16 %v1423_v29, %v1422_v5  ;;  %v1420_v20 = vsel %vm1419_vm8, %v2682_v2, %v2692_v63 }
 0x19b   : > { %v2378_v22 = vpack.c.bf16 %v1421_v15, %v1420_v20 }
 0x19c   : > { %2303 = vmatmul.mubr.msk.bf16.gmra.mxu0 %vm685_vm12, %v2742_v58 }
 0x19d   : > { %1075 = vmatprep.mubr.bf16.mxu0 %v2836_v0 }
 0x1a0   : > { %2317 = vmatmul.mubr.msk.bf16.gmra.mxu1 %vm685_vm12, %v2743_v60 }
 0x1a1   : > { %1176 = vmatprep.mubr.bf16.mxu1 %v2836_v0 }
 0x1a4   : > { %2324 = vmatmul.mubr.msk.bf16.vlgmr.msra.gmra.mxu0 %vm685_vm12, %v2744_v4 }
 0x1a5   : > { %2351 = vmatpush1.bf16.msk.msra.mxu0 %vm2349_vm5, %v2350_v6  ;;  %1085 = vmatprep.mubr.bf16.mxu0 %v2836_v0  ;;  %vm2158_vm5 = vcmask 73728  }
 0x1a6   : > { %2376 = vmatprep.subr.msk.bf16.mxu0 %vm2374_vm0, %v2375_v8 }
 0x1a8   : > { %2338 = vmatmul.mubr.msk.bf16.vlgmr.msra.gmra.mxu1 %vm685_vm12, %v2745_v9 }
 0x1a9   : > { %2365 = vmatpush1.bf16.msk.msra.mxu1 %vm2363_vm11, %v2364_v10  ;;  %1186 = vmatprep.mubr.bf16.mxu1 %v2836_v0 }
 0x1ac   : > { %2325 = vmatmul.mubr.msk.bf16.gmra.mxu0 %vm685_vm12, %v2746_v11 }
 0x1ad   : > { %1281 = vmatprep.mubr.bf16.mxu0 %v2836_v0 }
 0x1b0   : > { %2339 = vmatmul.mubr.msk.bf16.gmra.mxu1 %vm685_vm12, %v2747_v12 }
 0x1b1   : > { %1382 = vmatprep.mubr.bf16.mxu1 %v2836_v0 }
 0x1b4   : > { %2352 = vmatmul.mubr.msk.bf16.vlgmr.msra.gmra.mxu0 %vm685_vm12, %v2748_v21 }
 0x1b5   : > { %2379 = vmatpush1.bf16.msk.msra.mxu0 %vm2377_vm3, %v2378_v22  ;;  %1291 = vmatprep.mubr.bf16.mxu0 %v2836_v0 }
 0x1b8   : > { %2366 = vmatmul.mubr.msk.bf16.vlgmr.msra.gmra.mxu1 %vm685_vm12, %v2749_v49 }
 0x1b9   : > { %1392 = vmatprep.mubr.bf16.mxu1 %v2836_v0 }
 0x1bc   : > { %2353 = vmatmul.mubr.msk.bf16.gmra.mxu0 %vm685_vm12, %v2750_v23 }
 0x1bd   : > { %1485 = vmatprep.mubr.bf16.mxu0 %v2836_v0 }
 0x1c0   : > { %2367 = vmatmul.mubr.msk.bf16.gmra.mxu1 %vm685_vm12, %v2751_v24 }
 0x1c4   : > { %2380 = vmatmul.mubr.msk.bf16.vlgmr.msra.gmra.mxu0 %vm685_vm12, %v2752_v25 }
 0x1c5   : > { %1495 = vmatprep.mubr.bf16.mxu0 %v2836_v0 }
 0x1cc   : > { %2381 = vmatmul.mubr.msk.bf16.gmra.mxu0 %vm685_vm12, %v2753_v26  ;;  %vm1800_vm12 = vcmask 523264  }
 0x244   : > { %v726_v27 = vpop.f32.mrf.mxu0 }
 0x246   : > { %v728_v30 = vpop.f32.mrf.mxu0 }
 0x248   : > { %v730_v31 = vpop.f32.mrf.mxu0  ;;  %v795_v32 = vpop.f32.mrf.mxu1 }
 0x249   : > { %v796_v15 = vadd.f32 %v795_v32, %v726_v27 }
 0x24a   : > { %v732_v33 = vpop.f32.mrf.mxu0  ;;  %v797_v13 = vpop.f32.mrf.mxu1 }
 0x24b   : > { %v798_v49 = vadd.f32 %v797_v13, %v728_v30 }
 0x24c   : > { %v3270_v34 = vpop.f32.mrf.mxu0  ;;  %v799_v35 = vpop.f32.mrf.mxu1 }
 0x24d   : > { %v800_v20 = vadd.f32 %v799_v35, %v730_v31 }
 0x24e   : > { %v3272_v36 = vpop.f32.mrf.mxu0  ;;  %v801_v37 = vpop.f32.mrf.mxu1 }
 0x24f   : > { %v802_v23 = vadd.f32 %v801_v37, %v732_v33 }
 0x250   : > { %v3274_v38 = vpop.f32.mrf.mxu0  ;;  %v805_v0 = vpop.f32.mrf.mxu1 }
 0x251   : > { %v806_v31 = vadd.f32 %v805_v0, %v3270_v34 }
 0x252   : > { %v3276_v39 = vpop.f32.mrf.mxu0  ;;  %v3278_v40 = vpop.f32.mrf.mxu1 }
 0x254   : > { %v809_v41 = vpop.f32.mrf.mxu1  ;;  %v892_v43 = vpop.f32.mrf.mxu0 }
 0x255   : > { %v911_v24 = vadd.f32 %v892_v43, %v796_v15  ;;  %v810_v32 = vadd.f32 %v809_v41, %v3274_v38 }
 0x256   : > { %v3280_v17 = vpop.f32.mrf.mxu1  ;;  %v894_v18 = vpop.f32.mrf.mxu0 }
 0x258   : > { %v896_v44 = vpop.f32.mrf.mxu0  ;;  %v993_v45 = vpop.f32.mrf.mxu1 }
 0x259   : > { %v913_v25 = vadd.f32 %v896_v44, %v800_v20  ;;  %v812_v44 = vadd.f32 %v3280_v17, %v3276_v39 }
 0x25a   : > { %v898_v46 = vpop.f32.mrf.mxu0  ;;  %v995_v47 = vpop.f32.mrf.mxu1 }
 0x25c   : > { %v902_v48 = vpop.f32.mrf.mxu0  ;;  %v997_v50 = vpop.f32.mrf.mxu1 }
 0x25e   : > { %v3282_v51 = vpop.f32.mrf.mxu0  ;;  %v999_v28 = vpop.f32.mrf.mxu1 }
 0x260   : > { %v906_v52 = vpop.f32.mrf.mxu0  ;;  %v3284_v53 = vpop.f32.mrf.mxu1 }
 0x262   : > { %v3286_v54 = vpop.f32.mrf.mxu0  ;;  %v3288_v55 = vpop.f32.mrf.mxu1 }
 0x264   : > { %v3290_v56 = vpop.f32.mrf.mxu1  ;;  %v1077_v57 = vpop.f32.mrf.mxu0 }
 0x266   : > { %v3292_v58 = vpop.f32.mrf.mxu1  ;;  %v1079_v14 = vpop.f32.mrf.mxu0 }
 0x267   : > { %3719 = vst [vmem:[#allocation6_spill] sm:$0xff] %v3292_v58 }
 0x268   : > { %v1081_v59 = vpop.f32.mrf.mxu0  ;;  %v1178_v60 = vpop.f32.mrf.mxu1 }
 0x26a   : > { %v1083_v61 = vpop.f32.mrf.mxu0  ;;  %v1180_v62 = vpop.f32.mrf.mxu1 }
 0x26c   : > { %v3294_v63 = vpop.f32.mrf.mxu0  ;;  %v1182_v1 = vpop.f32.mrf.mxu1 }
 0x26d   : > { %3720 = vst [vmem:[#allocation7_spill] sm:$0xff] %v3294_v63 }
 0x26e   : > { %v3296_v2 = vpop.f32.mrf.mxu0  ;;  %v1184_v3 = vpop.f32.mrf.mxu1 }
 0x26f   : > { %3721 = vst [vmem:[#allocation8_spill] sm:$0xff] %v3296_v2 }
 0x270   : > { %v1091_v19 = vpop.f32.mrf.mxu0  ;;  %v3298_v4 = vpop.f32.mrf.mxu1 }
 0x271   : > { %3722 = vst [vmem:[#allocation9_spill] sm:$0xff] %v3298_v4 }
 0x272   : > { %v3300_v29 = vpop.f32.mrf.mxu0  ;;  %v3302_v5 = vpop.f32.mrf.mxu1 }
 0x273   : > { %3723 = vst [vmem:[#allocation10_spill] sm:$0xff] %v3300_v29  ;;  %3724 = vst [vmem:[#allocation11_spill] sm:$0xff] %v3302_v5  ;;  %v912_v5 = vadd.f32 %v894_v18, %v798_v49  ;;  %v1014_v29 = vadd.f32 %v997_v50, %v913_v25  ;;  %v808_v18 = vadd.f32 %v3278_v40, %v3272_v36 }
 0x274   : > { %v3304_v6 = vpop.f32.mrf.mxu1  ;;  %v1283_v7 = vpop.f32.mrf.mxu0 }
 0x275   : > { %3725 = vst [vmem:[#allocation12_spill] sm:$0xff] %v3304_v6  ;;  %v1012_v6 = vadd.f32 %v993_v45, %v911_v24  ;;  %v1013_v2 = vadd.f32 %v995_v47, %v912_v5  ;;  %v1098_v27 = vadd.f32 %v1081_v59, %v1014_v29  ;;  %v915_v45 = vadd.f32 %v902_v48, %v806_v31 }
 0x276   : > { %v3306_v42 = vpop.f32.mrf.mxu1  ;;  %v1285_v8 = vpop.f32.mrf.mxu0  ;;  %v916_v38 = vadd.f32 %v3282_v51, %v808_v18 }
 0x277   : > { %3726 = vst [vmem:[#allocation13_spill] sm:$0xff] %v3306_v42  ;;  %v914_v42 = vadd.f32 %v898_v46, %v802_v23  ;;  %v1096_v58 = vadd.f32 %v1077_v57, %v1012_v6  ;;  %v1097_v13 = vadd.f32 %v1079_v14, %v1013_v2  ;;  %v1199_v43 = vadd.f32 %v1182_v1, %v1098_v27 }
 0x278   : > { %v1287_v9 = vpop.f32.mrf.mxu0  ;;  %v1384_v10 = vpop.f32.mrf.mxu1  ;;  %v917_v46 = vadd.f32 %v906_v52, %v810_v32  ;;  %v1016_v41 = vadd.f32 %v3284_v53, %v915_v45  ;;  %v918_v57 = vadd.f32 %v3286_v54, %v812_v44  ;;  %v1017_v48 = vadd.f32 %v3288_v55, %v916_v38  ;;  %v3727_v52 = vld [vmem:[#allocation6_spill] sm:$0xff]  ;;  %v3730_v29 = vld [vmem:[#allocation9_spill] sm:$0xff] }
 0x279   : > { %v1015_v63 = vadd.f32 %v999_v28, %v914_v42  ;;  %v1197_v35 = vadd.f32 %v1178_v60, %v1096_v58  ;;  %v1198_v50 = vadd.f32 %v1180_v62, %v1097_v13  ;;  %v1304_v0 = vadd.f32 %v1287_v9, %v1199_v43  ;;  %v2760_v38 = vld [vmem:[%s3690_s5 + $0x60] sm:$0xff]  }
 0x27a   : > { %v1289_v11 = vpop.f32.mrf.mxu0  ;;  %v1386_v12 = vpop.f32.mrf.mxu1  ;;  %v1018_v58 = vadd.f32 %v3290_v56, %v917_v46  ;;  %v1019_v60 = vadd.f32 %v3727_v52, %v918_v57  ;;  %v3729_v56 = vld [vmem:[#allocation8_spill] sm:$0xff]  ;;  %v3731_v6 = vld [vmem:[#allocation10_spill] sm:$0xff] }
 0x27b   : > { %v1099_v37 = vadd.f32 %v1083_v61, %v1015_v63  ;;  %v1302_v34 = vadd.f32 %v1283_v7, %v1197_v35  ;;  %v1303_v40 = vadd.f32 %v1285_v8, %v1198_v50  ;;  %v3728_v61 = vld [vmem:[#allocation7_spill] sm:$0xff] }
 0x27c   : > { %v3308_v21 = vpop.f32.mrf.mxu0  ;;  %v1388_v22 = vpop.f32.mrf.mxu1  ;;  %v1100_v62 = vadd.f32 %v3728_v61, %v1016_v41  ;;  %v1102_v63 = vadd.f32 %v1091_v19, %v1018_v58  ;;  %v1103_v7 = vadd.f32 %v3731_v6, %v1019_v60  ;;  %v3732_v8 = vld [vmem:[#allocation12_spill] sm:$0xff]  ;;  %v2756_v50 = vld [vmem:[%s3690_s5 + $0x70] sm:$0xff]  }
 0x27d   : > { %v1200_v28 = vadd.f32 %v1184_v3, %v1099_v37  ;;  %v1403_v59 = vadd.f32 %v1384_v10, %v1302_v34  ;;  %v1405_v17 = vadd.f32 %v1388_v22, %v1304_v0  ;;  %v1404_v1 = vadd.f32 %v1386_v12, %v1303_v40  ;;  %v2758_v34 = vld [vmem:[%s3690_s5 + $0x68] sm:$0xff]   ;;  %v2761_v41 = vld [vmem:[%s3690_s5 + $0x20] sm:$0xff]   ;;  %v2762_v57 = vld [vmem:[%s3690_s5 + $0x58] sm:$0xff]  }
 0x27e   : > { %v3310_v26 = vpop.f32.mrf.mxu0  ;;  %v1390_v16 = vpop.f32.mrf.mxu1  ;;  %v1101_v3 = vadd.f32 %v3729_v56, %v1017_v48  ;;  %v1201_v5 = vadd.f32 %v3730_v29, %v1100_v62  ;;  %v1203_v9 = vadd.f32 %v3732_v8, %v1102_v63  ;;  %v3734_v20 = vld [vmem:[#allocation13_spill] sm:$0xff]  ;;  %v2763_v58 = vld [vmem:[%s3690_s5 + $0x18] sm:$0xff]  }
 0x27f   : > { %v1305_v39 = vadd.f32 %v1289_v11, %v1200_v28  ;;  %v3733_v11 = vld [vmem:[#allocation11_spill] sm:$0xff]  ;;  %v1204_v22 = vadd.f32 %v3734_v20, %v1103_v7  ;;  %v2759_v0 = vld [vmem:[%s3690_s5 + $0x28] sm:$0xff]   ;;  %v2768_v48 = vld [vmem:[%s3690_s5 + $0x40] sm:$0xff]  }
 0x280   : > { %v1297_v4 = vpop.f32.mrf.mxu0  ;;  %v1394_v30 = vpop.f32.mrf.mxu1  ;;  %v1202_v12 = vadd.f32 %v3733_v11, %v1101_v3  ;;  %v1306_v49 = vadd.f32 %v3308_v21, %v1201_v5  ;;  %v2757_v28 = vld [vmem:[%s3690_s5 + $0x30] sm:$0xff]   ;;  %v2769_v63 = vld [vmem:[%s3690_s5] sm:$0xff]  }
 0x281   : > { %v1406_v53 = vadd.f32 %v1390_v16, %v1305_v39  ;;  %v1308_v23 = vadd.f32 %v1297_v4, %v1203_v9 }
 0x282   : > { %v1299_v33 = vpop.f32.mrf.mxu0  ;;  %v1396_v14 = vpop.f32.mrf.mxu1  ;;  %v1307_v31 = vadd.f32 %v3310_v26, %v1202_v12  ;;  %v1407_v32 = vadd.f32 %v1394_v30, %v1306_v49  ;;  %v2754_v30 = vld [vmem:[%s3690_s5 + $0x78] sm:$0xff]  }
 0x283   : > { %v1309_v13 = vadd.f32 %v1299_v33, %v1204_v22  ;;  %v2755_v33 = vld [vmem:[%s3690_s5 + $0x38] sm:$0xff]   ;;  %2537 = vmatprep.subr.bf16.mxu1 %v2754_v30 }
 0x284   : > { %v1487_v47 = vpop.f32.mrf.mxu0  ;;  %v1398_v42 = vpop.f32.mrf.mxu1  ;;  %v1408_v43 = vadd.f32 %v1396_v14, %v1307_v31  ;;  %2538 = vmatpush3.bf16.msra.mxu1 %v2755_v33  ;;  %v2764_v14 = vld [vmem:[%s3690_s5 + $0x50] sm:$0xff]   ;;  %v1615_v31 = vld [vmem:[%s3689_s4 + $0x8] sm:$0xff] }
 0x285   : > { %v3325_v2 = vadd.f32 %v1487_v47, %v1403_v59  ;;  %v1409_v35 = vadd.f32 %v1398_v42, %v1308_v23  ;;  %2539 = vmatprep.subr.bf16.mxu1 %v2756_v50  ;;  %v2766_v59 = vld [vmem:[%s3690_s5 + $0x48] sm:$0xff]  }
 0x286   : > { %v1489_v36 = vpop.f32.mrf.mxu0  ;;  %v1400_v25 = vpop.f32.mrf.mxu1 }
 0x287   : > { %v3333_v10 = vadd.f32 %v1489_v36, %v1404_v1  ;;  %v1410_v18 = vadd.f32 %v1400_v25, %v1309_v13  ;;  %v2765_v36 = vld [vmem:[%s3690_s5 + $0x10] sm:$0xff]   ;;  %v1617_v13 = vld [vmem:[%s3689_s4 + $0x18] sm:$0xff] }
 0x288   : > { %v1491_v51 = vpop.f32.mrf.mxu0  ;;  %2540 = vmatpush3.bf16.msra.mxu1 %v2757_v28 }
 0x289   : > { %v3327_v54 = vadd.f32 %v1491_v51, %v1405_v17  ;;  %2541 = vmatprep.subr.bf16.mxu1 %v2758_v34  ;;  %v2767_v17 = vld [vmem:[%s3690_s5 + $0x8] sm:$0xff]  }
 0x28a   : > { %v1493_v55 = vpop.f32.mrf.mxu0  ;;  %v3735_v51 = vld [vmem:[#allocation5_spill] sm:$0xff] }
 0x28b   : > { %v2694_v19 = vpack.i.bf16 %v3327_v54, %v3325_v2  ;;  %v3337_v16 = vadd.f32 %v1493_v55, %v1406_v53  ;;  %vm1822_vm14 = vcmp.eq.s32.totalorder %v3735_v51, 0  ;;  %vm1933_vm1 = vcmp.eq.s32.totalorder %v3735_v51, 3 }
 0x28c   : > { %v1497_v15 = vpop.f32.mrf.mxu0  ;;  %2542 = vmatpush3.bf16.msra.mxu1 %v2759_v0  ;;  %vm1970_vm4 = vcmp.eq.s32.totalorder %v3735_v51, 4  ;;  %vm2007_vm2 = vcmp.eq.s32.totalorder %v3735_v51, 5  ;;  %vm2044_vm7 = vcmp.eq.s32.totalorder %v3735_v51, 6  ;;  %vm2081_vm8 = vcmp.eq.s32.totalorder %v3735_v51, 7 }
 0x28d   : > { %v2699_v24 = vpack.i.bf16 %v3337_v16, %v3333_v10  ;;  %2695 = vrot.lane.b32.xlu0 %v2694_v19, %s2841_s19  ;;  %v3347_v44 = vadd.f32 %v1497_v15, %v1407_v32  ;;  %2543 = vmatprep.subr.bf16.mxu1 %v2760_v38  ;;  %v1616_v32 = vld [vmem:[%s3689_s4 + $0x10] sm:$0xff]  ;;  %vm2118_vm10 = vcmp.eq.s32.totalorder %v3735_v51, 8  ;;  %vm2155_vm13 = vcmp.eq.s32.totalorder %v3735_v51, 9 }
 0x28e   : > { %v1499_v27 = vpop.f32.mrf.mxu0 }
 0x28f   : > { %2700 = vrot.lane.b32.xlu1 %v2699_v24, %s2841_s19  ;;  %v3351_v45 = vadd.f32 %v1499_v27, %v1408_v43  ;;  %v1614_v27 = vld [vmem:[%s3689_s4] sm:$0xff] }
 0x290   : > { %v1501_v37 = vpop.f32.mrf.mxu0  ;;  %2544 = vmatpush3.bf16.msra.mxu1 %v2761_v41 }
 0x291   : > { %v3349_v4 = vadd.f32 %v1501_v37, %v1409_v35  ;;  %2545 = vmatprep.subr.bf16.mxu1 %v2762_v57 }
 0x292   : > { %v1503_v21 = vpop.f32.mrf.mxu0 }
 0x293   : > { %v2704_v46 = vpack.i.bf16 %v3349_v4, %v3347_v44  ;;  %v3355_v47 = vadd.f32 %v1503_v21, %v1410_v18 }
 0x294   : > { %2546 = vmatpush3.bf16.msra.mxu1 %v2763_v58 }
 0x295   : > { %v2709_v26 = vpack.i.bf16 %v3355_v47, %v3351_v45  ;;  %2705 = vrot.lane.b32.xlu0 %v2704_v46, %s2841_s19  ;;  %2547 = vmatprep.subr.bf16.mxu1 %v2764_v14 }
 0x297   : > { %2710 = vrot.lane.b32.xlu1 %v2709_v26, %s2841_s19  ;;  %s297_s19 = scalar_lea.vmem [#allocation2], %s296_s20 }
 0x298   : > { %2548 = vmatpush3.bf16.msra.mxu1 %v2765_v36  ;;  %s2184_s23 = sshll.u32 %s297_s19, 4  ;;  %s2185_s23 = int_to_ptr.vmem [resolvable:$true] %s2184_s23 }
 0x299   : > { %2549 = vmatprep.subr.bf16.mxu1 %v2766_v59  ;;  %s2774_s12 = scalar_lea.vmem %s2185_s23, 16 }
 0x29a   : > { %p2775_p11 = scmp.ne.s32.totalorder %s2185_s23, %s2774_s12 }
 0x29c   : > { %2550 = vmatpush3.bf16.msra.mxu1 %v2767_v17  ;;  %p2776_p12 = pnand %p2775_p11, %p2929_p5 }
 0x29d   : > { %2551 = vmatprep.subr.bf16.mxu1 %v2768_v48 }
 0x29e   : > { %p2777_p13 = pneg %p2776_p12 }
 0x2a0   : > { %2552 = vmatpush3.bf16.msra.mxu1 %v2769_v63 }
 0x2ff   : > { %v2696_v40 = vpop.permute.xlu0 %2695 }
 0x300   : > { %v2698_v52 = vunpack.i.h.bf16 %v2696_v40  ;;  %v2697_v60 = vunpack.i.l.bf16 %v2696_v40 }
 0x301   : > { %v2701_v39 = vpop.permute.xlu1 %2700 }
 0x302   : > { %v2703_v61 = vunpack.i.h.bf16 %v2701_v39  ;;  %v2702_v62 = vunpack.i.l.bf16 %v2701_v39 }
 0x304   : > { %v1531_v1 = vsel %vm1112_vm9, %v2698_v52, %v2703_v61  ;;  %v1535_v53 = vsel %vm1112_vm9, %v2703_v61, %v2698_v52  ;;  %v1530_v56 = vsel %vm1112_vm9, %v2697_v60, %v2702_v62  ;;  %v1534_v3 = vsel %vm1112_vm9, %v2702_v62, %v2697_v60 }
 0x305   : > { %v1538_v29 = vmax.f32 %v3325_v2, %v1530_v56  ;;  %v1540_v5 = vmax.f32 %v3327_v54, %v1531_v1  ;;  %v1539_v6 = vmax.f32 %v3333_v10, %v1534_v3  ;;  %v1541_v7 = vmax.f32 %v3337_v16, %v1535_v53  ;;  %v2439_v53 = vld [vmem:[%s3691_s6] sm:$0xff]  }
 0x307   : > { %v2706_v42 = vpop.permute.xlu0 %2705  ;;  %v2714_v55 = vpack.i.bf16 %v1540_v5, %v1538_v29  ;;  %v2719_v8 = vpack.i.bf16 %v1541_v7, %v1539_v6 }
 0x308   : > { %v2708_v19 = vunpack.i.h.bf16 %v2706_v42  ;;  %v2707_v11 = vunpack.i.l.bf16 %v2706_v42 }
 0x309   : > { %2715 = vrot.lane.b32.xlu0 %v2714_v55, %s2843_s21  ;;  %2720 = vrot.lane.b32.xlu1 %v2719_v8, %s2843_s21  ;;  %v2711_v9 = vpop.permute.xlu1 %2710 }
 0x30a   : > { %v2713_v12 = vunpack.i.h.bf16 %v2711_v9  ;;  %v2712_v15 = vunpack.i.l.bf16 %v2711_v9 }
 0x30c   : > { %v1533_v2 = vsel %vm1112_vm9, %v2708_v19, %v2713_v12  ;;  %v1537_v54 = vsel %vm1112_vm9, %v2713_v12, %v2708_v19  ;;  %v1532_v10 = vsel %vm1112_vm9, %v2707_v11, %v2712_v15  ;;  %v1536_v16 = vsel %vm1112_vm9, %v2712_v15, %v2707_v11  ;;  %v2521_v19 = vld [vmem:[%s3691_s6 + $0x20] sm:$0xff]  }
 0x30d   : > { %v1543_v20 = vmax.f32 %v3351_v45, %v1536_v16  ;;  %v1545_v22 = vmax.f32 %v3355_v47, %v1537_v54  ;;  %v1542_v49 = vmax.f32 %v3347_v44, %v1532_v10  ;;  %v1544_v23 = vmax.f32 %v3349_v4, %v1533_v2 }
 0x30e   : > { %v2441_v2 = vunpack.c.h.bf16 %v2439_v53  ;;  %v2456_v54 = vunpack.c.l.bf16 %v2521_v19  ;;  %vm1859_vm9 = vcmp.eq.s32.totalorder %v3735_v51, 1 }
 0x30f   : > { %v2729_v24 = vpack.i.bf16 %v1545_v22, %v1543_v20  ;;  %v2724_v25 = vpack.i.bf16 %v1544_v23, %v1542_v49 }
 0x311   : > { %2730 = vrot.lane.b32.xlu1 %v2729_v24, %s2843_s21  ;;  %2725 = vrot.lane.b32.xlu0 %v2724_v25, %s2843_s21  ;;  %v2457_v24 = vunpack.c.h.bf16 %v2521_v19  ;;  %s2778_s21 = sshll.u32 %s2845_s13, 4  ;;  %s2779_s21 = int_to_ptr.vmem [resolvable:$false] %s2778_s21 }
 0x312   : > { %s2780_s9 = scalar_lea.vmem %s2779_s21, 32  ;;  %p2781_p0 = scmp.lt.s32.totalorder %s2185_s23, %s2779_s21 }
 0x313   : > { %p2782_p1 = scmp.lt.s32.totalorder %s2780_s9, %s2774_s12 }
 0x315   : > { %1620 = vperm.xlu0 %2613, %v1614_v27   ;;  %1625 = vperm.xlu1 %2734, %v1615_v31   ;;  %p2783_p2 = por %p2782_p1, %p2781_p0 }
 0x317   : > { %p2784_p3 = pnand %p2783_p2, %p2777_p13 }
 0x319   : > { %1630 = vperm.xlu0 %2613, %v1616_v32   ;;  %1635 = vperm.xlu1 %2734, %v1617_v13  }
 0x37b   : > { %v2716_v35 = vpop.permute.xlu0 %2715  ;;  %v2721_v37 = vpop.permute.xlu1 %2720 }
 0x37c   : > { %v2718_v43 = vunpack.i.h.bf16 %v2716_v35  ;;  %v2717_v18 = vunpack.i.l.bf16 %v2716_v35  ;;  %v2723_v44 = vunpack.i.h.bf16 %v2721_v37  ;;  %v2722_v4 = vunpack.i.l.bf16 %v2721_v37  ;;  %v2525_v35 = vld [vmem:[%s3691_s6 + $0x40] sm:$0xff]  }
 0x37e   : > { %v1563_v21 = vsel %vm1318_vm6, %v2718_v43, %v2723_v44  ;;  %v1567_v45 = vsel %vm1318_vm6, %v2723_v44, %v2718_v43  ;;  %v1562_v46 = vsel %vm1318_vm6, %v2717_v18, %v2722_v4  ;;  %v1566_v47 = vsel %vm1318_vm6, %v2722_v4, %v2717_v18 }
 0x37f   : > { %v1572_v26 = vmax.f32 %v1540_v5, %v1563_v21  ;;  %v1570_v30 = vmax.f32 %v1538_v29, %v1562_v46  ;;  %v1571_v33 = vmax.f32 %v1539_v6, %v1566_v47  ;;  %v1573_v50 = vmax.f32 %v1541_v7, %v1567_v45  ;;  %v2519_v5 = vld [vmem:[%s3691_s6 + $0x10] sm:$0xff]  }
 0x380   : > { %v2440_v7 = vunpack.c.l.bf16 %v2439_v53  ;;  %v2448_v9 = vunpack.c.l.bf16 %v2519_v5  ;;  %v2472_v43 = vunpack.c.l.bf16 %v2525_v35  ;;  %v2527_v45 = vld [vmem:[%s3691_s6 + $0x50] sm:$0xff]   ;;  %v2473_v46 = vunpack.c.h.bf16 %v2525_v35 }
 0x381   : > { %v1578_v28 = vpack.c.bf16 %v1572_v26, %v1570_v30  ;;  %v1579_v34 = vpack.c.bf16 %v1573_v50, %v1571_v33  ;;  %v2480_v47 = vunpack.c.l.bf16 %v2527_v45 }
 0x383   : > { %1766 = vmatprep.mubr.bf16.mxu1 %v1579_v34  ;;  %v2731_v0 = vpop.permute.xlu1 %2730  ;;  %v2726_v38 = vpop.permute.xlu0 %2725  ;;  %v2529_v34 = vld [vmem:[%s3691_s6 + $0x60] sm:$0xff]  }
 0x384   : > { %v2733_v41 = vunpack.i.h.bf16 %v2731_v0  ;;  %v2732_v57 = vunpack.i.l.bf16 %v2731_v0  ;;  %v2728_v58 = vunpack.i.h.bf16 %v2726_v38  ;;  %v2727_v14 = vunpack.i.l.bf16 %v2726_v38  ;;  %1767 = vmatmul.mubr.bf16.vlgmr.msra.gmra.mxu1 %v1578_v28 }
 0x385   : > { %v2481_v0 = vunpack.c.h.bf16 %v2527_v45  ;;  %v2488_v38 = vunpack.c.l.bf16 %v2529_v34 }
 0x386   : > { %v1565_v36 = vsel %vm1318_vm6, %v2728_v58, %v2733_v41  ;;  %v1569_v40 = vsel %vm1318_vm6, %v2733_v41, %v2728_v58  ;;  %v1564_v59 = vsel %vm1318_vm6, %v2727_v14, %v2732_v57  ;;  %v1568_v39 = vsel %vm1318_vm6, %v2732_v57, %v2727_v14 }
 0x387   : > { %v1575_v17 = vmax.f32 %v1543_v20, %v1568_v39  ;;  %v1577_v48 = vmax.f32 %v1545_v22, %v1569_v40  ;;  %v1574_v52 = vmax.f32 %v1542_v49, %v1564_v59  ;;  %v1576_v60 = vmax.f32 %v1544_v23, %v1565_v36  ;;  %v2523_v49 = vld [vmem:[%s3691_s6 + $0x30] sm:$0xff]  }
 0x388   : > { %v2449_v22 = vunpack.c.h.bf16 %v2519_v5  ;;  %v2464_v25 = vunpack.c.l.bf16 %v2523_v49  ;;  %v2465_v37 = vunpack.c.h.bf16 %v2523_v49  ;;  %v2531_v40 = vld [vmem:[%s3691_s6 + $0x70] sm:$0xff]   ;;  %v2489_v59 = vunpack.c.h.bf16 %v2529_v34 }
 0x389   : > { %v1581_v61 = vpack.c.bf16 %v1577_v48, %v1575_v17  ;;  %v1580_v62 = vpack.c.bf16 %v1576_v60, %v1574_v52  ;;  %v2496_v39 = vunpack.c.l.bf16 %v2531_v40  ;;  %vm1896_vm6 = vcmp.eq.s32.totalorder %v3735_v51, 2 }
 0x38b   : > { %1774 = vmatprep.mubr.bf16.mxu1 %v1581_v61 }
 0x38c   : > { %1775 = vmatmul.mubr.bf16.gmra.mxu1 %v1580_v62  ;;  %v2533_v62 = vld [vmem:[%s3691_s6 + $0x80] sm:$0xff]  }
 0x38d   : > { %v2504_v53 = vunpack.c.l.bf16 %v2533_v62  ;;  %v2505_v19 = vunpack.c.h.bf16 %v2533_v62 }
 0x390   : > { %v1621_v3 = vpop.permute.xlu0 %1620  ;;  %v1626_v11 = vpop.permute.xlu1 %1625 }
 0x444   : > { %v2553_v63 = vpop.f32.mrf.mxu1 }
 0x446   : > { %v2554_v1 = vpop.f32.mrf.mxu1 }
 0x447   : > { %v2555_v56 = vadd.f32 %v2554_v1, %v2553_v63  ;;  %v2497_v1 = vunpack.c.h.bf16 %v2531_v40 }
 0x448   : > { %v2556_v29 = vpop.f32.mrf.mxu1 }
 0x449   : > { %v1769_v6 = vadd.f32 %v2555_v56, %v1621_v3 }
 0x44a   : > { %v2557_v42 = vpop.f32.mrf.mxu1 }
 0x44b   : > { %v3471_v55 = vmax.f32 %v1769_v6, 0.0  ;;  %v2558_v8 = vadd.f32 %v2557_v42, %v2556_v29  ;;  %v1631_v42 = vpop.permute.xlu0 %1630 }
 0x44c   : > { %v2559_v26 = vpop.f32.mrf.mxu1 }
 0x44d   : > { %v1772_v12 = vadd.f32 %v2558_v8, %v1626_v11  ;;  %v1796_v15 = vmul.f32 %v2440_v7, %v3471_v55  ;;  %v1834_v20 = vmul.f32 %v2448_v9, %v3471_v55  ;;  %v1871_v13 = vmul.f32 %v2456_v54, %v3471_v55  ;;  %v2535_v7 = vld [vmem:[%s3691_s6 + $0x90] sm:$0xff]  }
 0x44e   : > { %v1908_v21 = vmul.f32 %v2464_v25, %v3471_v55  ;;  %v1945_v28 = vmul.f32 %v2472_v43, %v3471_v55  ;;  %v2560_v41 = vpop.f32.mrf.mxu1  ;;  %v1982_v36 = vmul.f32 %v2480_v47, %v3471_v55  ;;  %v2019_v61 = vmul.f32 %v2488_v38, %v3471_v55 }
 0x44f   : > { %v3477_v10 = vmax.f32 %v1772_v12, 0.0  ;;  %v1801_v16 = vsel %vm1800_vm12, %v1796_v15, 0.0  ;;  %v1838_v31 = vsel %vm1800_vm12, %v1834_v20, 0.0  ;;  %v1875_v44 = vsel %vm1800_vm12, %v1871_v13, 0.0  ;;  %v1636_v20 = vpop.permute.xlu1 %1635  ;;  %v2520_v13 = vld [vmem:[%s3691_s6 + $0x18] sm:$0xff]  }
 0x450   : > { %1802 = vadd.xlane.f32.xlu0 %v1801_v16  ;;  %v1912_v33 = vsel %vm1800_vm12, %v1908_v21, 0.0  ;;  %v1949_v58 = vsel %vm1800_vm12, %v1945_v28, 0.0  ;;  %v2562_v17 = vpop.f32.mrf.mxu1  ;;  %v1986_v52 = vsel %vm1800_vm12, %v1982_v36, 0.0  ;;  %v2561_v63 = vadd.f32 %v2560_v41, %v2559_v26  ;;  %v2518_v16 = vld [vmem:[%s3691_s6 + $0x8] sm:$0xff]  }
 0x451   : > { %v1797_v23 = vmul.f32 %v2441_v2, %v3477_v10  ;;  %v1835_v32 = vmul.f32 %v2449_v22, %v3477_v10  ;;  %v1872_v4 = vmul.f32 %v2457_v24, %v3477_v10  ;;  %v1909_v50 = vmul.f32 %v2465_v37, %v3477_v10 }
 0x452   : > { %v1946_v14 = vmul.f32 %v2473_v46, %v3477_v10  ;;  %v1983_v60 = vmul.f32 %v2481_v0, %v3477_v10  ;;  %v2563_v56 = vpop.f32.mrf.mxu1  ;;  %v2023_v29 = vsel %vm1800_vm12, %v2019_v61, 0.0  ;;  %v2020_v5 = vmul.f32 %v2489_v59, %v3477_v10 }
 0x453   : > { %v1804_v27 = vsel %vm1800_vm12, %v1797_v23, 0.0  ;;  %v1841_v18 = vsel %vm1800_vm12, %v1835_v32, 0.0  ;;  %v1878_v30 = vsel %vm1800_vm12, %v1872_v4, 0.0  ;;  %v1915_v57 = vsel %vm1800_vm12, %v1909_v50, 0.0 }
 0x454   : > { %1805 = vadd.xlane.f32.xlu1 %v1804_v27  ;;  %1839 = vadd.xlane.f32.xlu0 %v1838_v31  ;;  %v1952_v48 = vsel %vm1800_vm12, %v1946_v14, 0.0  ;;  %v1989_v3 = vsel %vm1800_vm12, %v1983_v60, 0.0  ;;  %v2056_v6 = vmul.f32 %v2496_v39, %v3471_v55  ;;  %v1777_v8 = vadd.f32 %v2561_v63, %v1631_v42 }
 0x455   : > { %v2564_v9 = vadd.f32 %v2563_v56, %v2562_v17  ;;  %v2512_v11 = vunpack.c.l.bf16 %v2535_v7  ;;  %v2026_v12 = vsel %vm1800_vm12, %v2020_v5, 0.0  ;;  %v2057_v2 = vmul.f32 %v2497_v1, %v3477_v10  ;;  %v2528_v17 = vld [vmem:[%s3691_s6 + $0x58] sm:$0xff]   ;;  %v2530_v1 = vld [vmem:[%s3691_s6 + $0x68] sm:$0xff]  }
 0x456   : > { %v2060_v15 = vsel %vm1800_vm12, %v2056_v6, 0.0  ;;  %v2093_v54 = vmul.f32 %v2504_v53, %v3471_v55  ;;  %v3534_v22 = vmax.f32 %v1777_v8, 0.0  ;;  %v2513_v23 = vunpack.c.h.bf16 %v2535_v7  ;;  %v2532_v7 = vld [vmem:[%s3691_s6 + $0x78] sm:$0xff]  }
 0x457   : > { %v1780_v49 = vadd.f32 %v2564_v9, %v1636_v20  ;;  %v2444_v24 = vunpack.c.l.bf16 %v2518_v16  ;;  %v2063_v25 = vsel %vm1800_vm12, %v2057_v2, 0.0  ;;  %v2094_v31 = vmul.f32 %v2505_v19, %v3477_v10 }
 0x458   : > { %1842 = vadd.xlane.f32.xlu1 %v1841_v18  ;;  %1876 = vadd.xlane.f32.xlu0 %v1875_v44  ;;  %v2097_v27 = vsel %vm1800_vm12, %v2093_v54, 0.0  ;;  %v2130_v32 = vmul.f32 %v2512_v11, %v3471_v55  ;;  %v2131_v35 = vmul.f32 %v2513_v23, %v3477_v10  ;;  %v2452_v37 = vunpack.c.l.bf16 %v2520_v13  ;;  %v2522_v55 = vld [vmem:[%s3691_s6 + $0x28] sm:$0xff]  }
 0x459   : > { %v2445_v43 = vunpack.c.h.bf16 %v2518_v16  ;;  %v3544_v18 = vmax.f32 %v1780_v49, 0.0  ;;  %v2100_v44 = vsel %vm1800_vm12, %v2094_v31, 0.0  ;;  %v1798_v21 = vmul.f32 %v2444_v24, %v3534_v22  ;;  %v2536_v24 = vld [vmem:[%s3691_s6 + $0x98] sm:$0xff]  }
 0x45a   : > { %v2134_v4 = vsel %vm1800_vm12, %v2130_v32, 0.0  ;;  %v2460_v45 = vunpack.c.l.bf16 %v2522_v55  ;;  %v2453_v46 = vunpack.c.h.bf16 %v2520_v13  ;;  %v2137_v10 = vsel %vm1800_vm12, %v2131_v35, 0.0 }
 0x45b   : > { %v1807_v47 = vsel %vm1800_vm12, %v1798_v21, 0.0  ;;  %v1836_v26 = vmul.f32 %v2452_v37, %v3534_v22  ;;  %v2461_v28 = vunpack.c.h.bf16 %v2522_v55  ;;  %v2492_v53 = vunpack.c.l.bf16 %v2530_v1 }
 0x45c   : > { %1879 = vadd.xlane.f32.xlu1 %v1878_v30  ;;  %1913 = vadd.xlane.f32.xlu0 %v1912_v33  ;;  %v1799_v30 = vmul.f32 %v2445_v43, %v3544_v18  ;;  %v2524_v33 = vld [vmem:[%s3691_s6 + $0x38] sm:$0xff]   ;;  %v1873_v38 = vmul.f32 %v2460_v45, %v3534_v22  ;;  %v1837_v41 = vmul.f32 %v2453_v46, %v3544_v18  ;;  %v2485_v56 = vunpack.c.h.bf16 %v2528_v17 }
 0x45d   : > { %v2468_v50 = vunpack.c.l.bf16 %v2524_v33  ;;  %v1844_v34 = vsel %vm1800_vm12, %v1836_v26, 0.0  ;;  %v2469_v14 = vunpack.c.h.bf16 %v2524_v33  ;;  %v1874_v39 = vmul.f32 %v2461_v28, %v3544_v18 }
 0x45e   : > { %v1810_v0 = vsel %vm1800_vm12, %v1799_v30, 0.0  ;;  %v1881_v36 = vsel %vm1800_vm12, %v1873_v38, 0.0  ;;  %v1847_v40 = vsel %vm1800_vm12, %v1837_v41, 0.0  ;;  %v2500_v42 = vunpack.c.l.bf16 %v2532_v7 }
 0x45f   : > { %v1910_v59 = vmul.f32 %v2468_v50, %v3534_v22  ;;  %v1884_v61 = vsel %vm1800_vm12, %v1874_v39, 0.0  ;;  %v1911_v63 = vmul.f32 %v2469_v14, %v3544_v18  ;;  %v2493_v8 = vunpack.c.h.bf16 %v2530_v1 }
 0x460   : > { %1916 = vadd.xlane.f32.xlu1 %v1915_v57  ;;  %1950 = vadd.xlane.f32.xlu0 %v1949_v58  ;;  %v2526_v57 = vld [vmem:[%s3691_s6 + $0x48] sm:$0xff]   ;;  %v2021_v11 = vmul.f32 %v2492_v53, %v3534_v22  ;;  %v2501_v54 = vunpack.c.h.bf16 %v2532_v7  ;;  %v2058_v49 = vmul.f32 %v2500_v42, %v3534_v22  ;;  %v2517_v37 = vunpack.c.h.bf16 %v2536_v24 }
 0x461   : > { %v2476_v58 = vunpack.c.l.bf16 %v2526_v57  ;;  %v1918_v60 = vsel %vm1800_vm12, %v1910_v59, 0.0  ;;  %v2022_v23 = vmul.f32 %v2493_v8, %v3544_v18 }
 0x462   : > { %v2029_v16 = vsel %vm1800_vm12, %v2021_v11, 0.0  ;;  %v2066_v31 = vsel %vm1800_vm12, %v2058_v49, 0.0  ;;  %v2059_v35 = vmul.f32 %v2501_v54, %v3544_v18  ;;  %v2133_v46 = vmul.f32 %v2517_v37, %v3544_v18 }
 0x463   : > { %v1947_v62 = vmul.f32 %v2476_v58, %v3534_v22  ;;  %v2032_v32 = vsel %vm1800_vm12, %v2022_v23, 0.0 }
 0x464   : > { %1953 = vadd.xlane.f32.xlu1 %v1952_v48  ;;  %1987 = vadd.xlane.f32.xlu0 %v1986_v52  ;;  %v2484_v48 = vunpack.c.l.bf16 %v2528_v17  ;;  %v2477_v52 = vunpack.c.h.bf16 %v2526_v57 }
 0x466   : > { %v1984_v5 = vmul.f32 %v2484_v48, %v3534_v22  ;;  %v1948_v6 = vmul.f32 %v2477_v52, %v3544_v18 }
 0x468   : > { %1990 = vadd.xlane.f32.xlu1 %v1989_v3  ;;  %2024 = vadd.xlane.f32.xlu0 %v2023_v29  ;;  %v1955_v3 = vsel %vm1800_vm12, %v1947_v62, 0.0  ;;  %v1921_v29 = vsel %vm1800_vm12, %v1911_v63, 0.0  ;;  %v1992_v9 = vsel %vm1800_vm12, %v1984_v5, 0.0  ;;  %v1958_v19 = vsel %vm1800_vm12, %v1948_v6, 0.0 }
 0x46c   : > { %2027 = vadd.xlane.f32.xlu1 %v2026_v12  ;;  %2061 = vadd.xlane.f32.xlu0 %v2060_v15  ;;  %v1985_v12 = vmul.f32 %v2485_v56, %v3544_v18  ;;  %v2534_v15 = vld [vmem:[%s3691_s6 + $0x88] sm:$0xff]  }
 0x46d   : > { %v2508_v2 = vunpack.c.l.bf16 %v2534_v15 }
 0x46e   : > { %v1995_v20 = vsel %vm1800_vm12, %v1985_v12, 0.0 }
 0x46f   : > { %v2095_v13 = vmul.f32 %v2508_v2, %v3534_v22 }
 0x470   : > { %2064 = vadd.xlane.f32.xlu1 %v2063_v25  ;;  %2098 = vadd.xlane.f32.xlu0 %v2097_v27  ;;  %v2516_v25 = vunpack.c.l.bf16 %v2536_v24  ;;  %v2509_v27 = vunpack.c.h.bf16 %v2534_v15 }
 0x471   : > { %v2103_v43 = vsel %vm1800_vm12, %v2095_v13, 0.0 }
 0x472   : > { %v2096_v21 = vmul.f32 %v2509_v27, %v3544_v18 }
 0x474   : > { %2101 = vadd.xlane.f32.xlu1 %v2100_v44  ;;  %2135 = vadd.xlane.f32.xlu0 %v2134_v4  ;;  %v2069_v44 = vsel %vm1800_vm12, %v2059_v35, 0.0  ;;  %v2132_v4 = vmul.f32 %v2516_v25, %v3534_v22  ;;  %v2106_v45 = vsel %vm1800_vm12, %v2096_v21, 0.0 }
 0x476   : > { %v2140_v55 = vsel %vm1800_vm12, %v2132_v4, 0.0 }
 0x478   : > { %2138 = vadd.xlane.f32.xlu1 %v2137_v10  ;;  %1808 = vadd.xlane.f32.xlu0 %v1807_v47  ;;  %v2143_v10 = vsel %vm1800_vm12, %v2133_v46, 0.0 }
 0x47c   : > { %1845 = vadd.xlane.f32.xlu1 %v1844_v34  ;;  %1811 = vadd.xlane.f32.xlu0 %v1810_v0 }
 0x480   : > { %1882 = vadd.xlane.f32.xlu1 %v1881_v36  ;;  %1848 = vadd.xlane.f32.xlu0 %v1847_v40 }
 0x484   : > { %1919 = vadd.xlane.f32.xlu1 %v1918_v60  ;;  %1885 = vadd.xlane.f32.xlu0 %v1884_v61 }
 0x488   : > { %1956 = vadd.xlane.f32.xlu1 %v1955_v3  ;;  %1922 = vadd.xlane.f32.xlu0 %v1921_v29 }
 0x48c   : > { %1993 = vadd.xlane.f32.xlu1 %v1992_v9  ;;  %1959 = vadd.xlane.f32.xlu0 %v1958_v19 }
 0x490   : > { %2030 = vadd.xlane.f32.xlu1 %v2029_v16  ;;  %1996 = vadd.xlane.f32.xlu0 %v1995_v20 }
 0x494   : > { %2067 = vadd.xlane.f32.xlu1 %v2066_v31  ;;  %2033 = vadd.xlane.f32.xlu0 %v2032_v32 }
 0x498   : > { %2104 = vadd.xlane.f32.xlu1 %v2103_v43  ;;  %2070 = vadd.xlane.f32.xlu0 %v2069_v44 }
 0x49c   : > { %2141 = vadd.xlane.f32.xlu1 %v2140_v55  ;;  %2107 = vadd.xlane.f32.xlu0 %v2106_v45 }
 0x4a0   : > { %2144 = vadd.xlane.f32.xlu0 %v2143_v10 }
 0x4d9   : > { %v1803_v47 = vpop.xlane.xlu0 %1802 }
 0x4dd   : > { %v1806_v26 = vpop.xlane.xlu1 %1805  ;;  %v1840_v30 = vpop.xlane.xlu0 %1839 }
 0x4de   : > { %v1813_v52 = vadd.f32 %v1806_v26, %v1803_v47 }
 0x4e1   : > { %v1843_v33 = vpop.xlane.xlu1 %1842  ;;  %v1877_v22 = vpop.xlane.xlu0 %1876 }
 0x4e2   : > { %v1850_v62 = vadd.f32 %v1843_v33, %v1840_v30 }
 0x4e5   : > { %v1880_v50 = vpop.xlane.xlu1 %1879  ;;  %v1914_v28 = vpop.xlane.xlu0 %1913 }
 0x4e6   : > { %v1887_v29 = vadd.f32 %v1880_v50, %v1877_v22 }
 0x4e9   : > { %v1917_v34 = vpop.xlane.xlu1 %1916  ;;  %v1951_v0 = vpop.xlane.xlu0 %1950 }
 0x4ea   : > { %v1924_v11 = vadd.f32 %v1917_v34, %v1914_v28 }
 0x4ed   : > { %v1954_v38 = vpop.xlane.xlu1 %1953  ;;  %v1988_v41 = vpop.xlane.xlu0 %1987 }
 0x4ee   : > { %v1961_v49 = vadd.f32 %v1954_v38, %v1951_v0 }
 0x4f1   : > { %v1991_v57 = vpop.xlane.xlu1 %1990  ;;  %v2025_v58 = vpop.xlane.xlu0 %2024 }
 0x4f2   : > { %v1998_v37 = vadd.f32 %v1991_v57, %v1988_v41 }
 0x4f5   : > { %v2028_v14 = vpop.xlane.xlu1 %2027  ;;  %v3613_v18 = vpop.xlane.xlu0 %2061 }
 0x4f6   : > { %v2035_v26 = vadd.f32 %v2028_v14, %v2025_v58 }
 0x4f9   : > { %v3615_v36 = vpop.xlane.xlu1 %2064  ;;  %v3617_v40 = vpop.xlane.xlu0 %2098 }
 0x4fd   : > { %v3619_v59 = vpop.xlane.xlu1 %2101  ;;  %v3621_v39 = vpop.xlane.xlu0 %2135 }
 0x501   : > { %v3623_v17 = vpop.xlane.xlu1 %2138  ;;  %v1809_v48 = vpop.xlane.xlu0 %1808 }
 0x502   : > { %v1814_v63 = vadd.f32 %v1813_v52, %v1809_v48 }
 0x505   : > { %v1846_v60 = vpop.xlane.xlu1 %1845  ;;  %v1812_v61 = vpop.xlane.xlu0 %1811 }
 0x506   : > { %v1851_v1 = vadd.f32 %v1850_v62, %v1846_v60  ;;  %v1815_v53 = vadd.f32 %v1814_v63, %v1812_v61  ;;  %v2072_v62 = vadd.f32 %v3615_v36, %v3613_v18 }
 0x508   : > { %v1816_v6 = vrot.slane %v1815_v53, 4 }
 0x509   : > { %v1883_v56 = vpop.xlane.xlu1 %1882  ;;  %v1849_v3 = vpop.xlane.xlu0 %1848 }
 0x50a   : > { %v1852_v5 = vadd.f32 %v1851_v1, %v1849_v3  ;;  %v1888_v7 = vadd.f32 %v1887_v29, %v1883_v56  ;;  %v1817_v12 = vadd.f32 %v1816_v6, %v1815_v53  ;;  %v2109_v6 = vadd.f32 %v3619_v59, %v3617_v40 }
 0x50c   : > { %v1853_v42 = vrot.slane %v1852_v5, 4  ;;  %v1818_v25 = vrot.slane %v1817_v12, 2 }
 0x50d   : > { %v1920_v8 = vpop.xlane.xlu1 %1919  ;;  %v1886_v9 = vpop.xlane.xlu0 %1885 }
 0x50e   : > { %v1889_v19 = vadd.f32 %v1888_v7, %v1886_v9  ;;  %v1854_v2 = vadd.f32 %v1853_v42, %v1852_v5  ;;  %v1925_v54 = vadd.f32 %v1924_v11, %v1920_v8  ;;  %v1819_v21 = vadd.f32 %v1818_v25, %v1817_v12  ;;  %v1787_v9 = vld [vmem:[%s3692_s7] sm:$0x1] }
 0x510   : > { %v1890_v15 = vrot.slane %v1889_v19, 4  ;;  %v1855_v31 = vrot.slane %v1854_v2, 2  ;;  %v1820_v28 = vrot.slane %v1819_v21, 1 }
 0x511   : > { %v1957_v16 = vpop.xlane.xlu1 %1956  ;;  %v1923_v20 = vpop.xlane.xlu0 %1922 }
 0x512   : > { %v1891_v23 = vadd.f32 %v1890_v15, %v1889_v19  ;;  %v1926_v24 = vadd.f32 %v1925_v54, %v1923_v20  ;;  %v1962_v27 = vadd.f32 %v1961_v49, %v1957_v16  ;;  %v1856_v46 = vadd.f32 %v1855_v31, %v1854_v2 }
 0x513   : > { %v1821_v1 = vadd.f32 %v1820_v28, %v1819_v21  ;;  %v2146_v2 = vadd.f32 %v3623_v17, %v3621_v39 }
 0x514   : > { %v1927_v32 = vrot.slane %v1926_v24, 4  ;;  %v1892_v44 = vrot.slane %v1891_v23, 2  ;;  %v1857_v48 = vrot.slane %v1856_v46, 1 }
 0x515   : > { %v1994_v13 = vpop.xlane.xlu1 %1993  ;;  %v1960_v35 = vpop.xlane.xlu0 %1959  ;;  %v1823_v19 = vsel %vm1822_vm14, %v1821_v1, 0.0 }
 0x516   : > { %v1963_v43 = vadd.f32 %v1962_v27, %v1960_v35  ;;  %v1928_v4 = vadd.f32 %v1927_v32, %v1926_v24  ;;  %v1999_v55 = vadd.f32 %v1998_v37, %v1994_v13  ;;  %v1893_v50 = vadd.f32 %v1892_v44, %v1891_v23 }
 0x517   : > { %v1858_v56 = vadd.f32 %v1857_v48, %v1856_v46  ;;  %v1824_v25 = vadd.f32 %v1823_v19, %v1787_v9 }
 0x518   : > { %v1964_v45 = vrot.slane %v1963_v43, 4  ;;  %v1929_v30 = vrot.slane %v1928_v4, 2  ;;  %v1894_v63 = vrot.slane %v1893_v50, 1 }
 0x519   : > { %v2031_v10 = vpop.xlane.xlu1 %2030  ;;  %v1997_v47 = vpop.xlane.xlu0 %1996  ;;  %v1860_v40 = vsel %vm1859_vm9, %v1858_v56, 0.0 }
 0x51a   : > { %v1965_v33 = vadd.f32 %v1964_v45, %v1963_v43  ;;  %v2000_v22 = vadd.f32 %v1999_v55, %v1997_v47  ;;  %v2036_v0 = vadd.f32 %v2035_v26, %v2031_v10  ;;  %v1930_v52 = vadd.f32 %v1929_v30, %v1928_v4 }
 0x51b   : > { %v1895_v18 = vadd.f32 %v1894_v63, %v1893_v50  ;;  %v1861_v35 = vadd.f32 %v1860_v40, %v1824_v25 }
 0x51c   : > { %v1966_v34 = vrot.slane %v1965_v33, 2  ;;  %v2001_v38 = vrot.slane %v2000_v22, 4  ;;  %v1931_v7 = vrot.slane %v1930_v52, 1 }
 0x51d   : > { %v2068_v41 = vpop.xlane.xlu1 %2067  ;;  %v2034_v57 = vpop.xlane.xlu0 %2033  ;;  %v1897_v27 = vsel %vm1896_vm6, %v1895_v18, 0.0 }
 0x51e   : > { %v2002_v60 = vadd.f32 %v2001_v38, %v2000_v22  ;;  %v2037_v61 = vadd.f32 %v2036_v0, %v2034_v57  ;;  %v1967_v58 = vadd.f32 %v1966_v34, %v1965_v33  ;;  %v2073_v3 = vadd.f32 %v2072_v62, %v2068_v41 }
 0x51f   : > { %v1932_v20 = vadd.f32 %v1931_v7, %v1930_v52  ;;  %v1898_v45 = vadd.f32 %v1897_v27, %v1861_v35 }
 0x520   : > { %v2003_v14 = vrot.slane %v2002_v60, 2  ;;  %v2038_v53 = vrot.slane %v2037_v61, 4  ;;  %v1968_v11 = vrot.slane %v1967_v58, 1 }
 0x521   : > { %v2105_v29 = vpop.xlane.xlu1 %2104  ;;  %v2071_v5 = vpop.xlane.xlu0 %2070  ;;  %v1934_v44 = vsel %vm1933_vm1, %v1932_v20, 0.0 }
 0x522   : > { %v2004_v42 = vadd.f32 %v2003_v14, %v2002_v60  ;;  %v2039_v8 = vadd.f32 %v2038_v53, %v2037_v61  ;;  %v2074_v36 = vadd.f32 %v2073_v3, %v2071_v5  ;;  %v2110_v15 = vadd.f32 %v2109_v6, %v2105_v29 }
 0x523   : > { %v1969_v32 = vadd.f32 %v1968_v11, %v1967_v58  ;;  %v1935_v33 = vadd.f32 %v1934_v44, %v1898_v45 }
 0x524   : > { %v2040_v12 = vrot.slane %v2039_v8, 2  ;;  %v2075_v59 = vrot.slane %v2074_v36, 4  ;;  %v2005_v49 = vrot.slane %v2004_v42, 1 }
 0x525   : > { %v2142_v54 = vpop.xlane.xlu1 %2141  ;;  %v2108_v16 = vpop.xlane.xlu0 %2107  ;;  %v1971_v10 = vsel %vm1970_vm4, %v1969_v32, 0.0 }
 0x526   : > { %v2041_v23 = vadd.f32 %v2040_v12, %v2039_v8  ;;  %v2111_v24 = vadd.f32 %v2110_v15, %v2108_v16  ;;  %v2076_v31 = vadd.f32 %v2075_v59, %v2074_v36  ;;  %v2147_v39 = vadd.f32 %v2146_v2, %v2142_v54 }
 0x527   : > { %v2006_v4 = vadd.f32 %v2005_v49, %v2004_v42  ;;  %v1972_v0 = vadd.f32 %v1971_v10, %v1935_v33 }
 0x528   : > { %v2042_v13 = vrot.slane %v2041_v23, 1  ;;  %v2112_v17 = vrot.slane %v2111_v24, 4  ;;  %v2077_v37 = vrot.slane %v2076_v31, 2 }
 0x529   : > { %v2145_v43 = vpop.xlane.xlu0 %2144  ;;  %v2008_v50 = vsel %vm2007_vm2, %v2006_v4, 0.0 }
 0x52a   : > { %v2113_v21 = vadd.f32 %v2112_v17, %v2111_v24  ;;  %v2148_v55 = vadd.f32 %v2147_v39, %v2145_v43  ;;  %v2078_v46 = vadd.f32 %v2077_v37, %v2076_v31  ;;  %v2043_v47 = vadd.f32 %v2042_v13, %v2041_v23 }
 0x52b   : > { %v2009_v52 = vadd.f32 %v2008_v50, %v1972_v0 }
 0x52c   : > { %v2114_v26 = vrot.slane %v2113_v21, 2  ;;  %v2149_v30 = vrot.slane %v2148_v55, 4  ;;  %v2079_v22 = vrot.slane %v2078_v46, 1  ;;  %v2045_v48 = vsel %vm2044_vm7, %v2043_v47, 0.0 }
 0x52d   : > { %v2046_v63 = vadd.f32 %v2045_v48, %v2009_v52 }
 0x52e   : > { %v2115_v28 = vadd.f32 %v2114_v26, %v2113_v21  ;;  %v2150_v34 = vadd.f32 %v2149_v30, %v2148_v55  ;;  %v2080_v38 = vadd.f32 %v2079_v22, %v2078_v46 }
 0x530   : > { %v2116_v41 = vrot.slane %v2115_v28, 1  ;;  %v2151_v57 = vrot.slane %v2150_v34, 2  ;;  %v2082_v62 = vsel %vm2081_vm8, %v2080_v38, 0.0 }
 0x531   : > { %v2083_v14 = vadd.f32 %v2082_v62, %v2046_v63 }
 0x532   : > { %v2117_v60 = vadd.f32 %v2116_v41, %v2115_v28  ;;  %v2152_v61 = vadd.f32 %v2151_v57, %v2150_v34 }
 0x534   : > { %v2153_v1 = vrot.slane %v2152_v61, 1  ;;  %v2119_v58 = vsel %vm2118_vm10, %v2117_v60, 0.0 }
 0x535   : > { %v2120_v56 = vadd.f32 %v2119_v58, %v2083_v14 }
 0x536   : > { %v2154_v53 = vadd.f32 %v2153_v1, %v2152_v61 }
 0x538   : > { %v2156_v3 = vsel %vm2155_vm13, %v2154_v53, 0.0 }
 0x539   : > { %v2157_v29 = vadd.f32 %v2156_v3, %v2120_v56 }
 0x53b   : > { %v2159_v5 = vsel %vm2158_vm5, %v2157_v29, -inf }
 0x53c   : > { %2160 = vmax.xlane.f32.xlu1 %v2159_v5 }
 0x5c5   : > { %v2161_v6 = vpop.xlane.xlu1 %2160 }
 0x5c6   : > { %v2162_v7 = vsub.f32 %v2157_v29, %v2161_v6 }
 0x5c8   : > { %v2163_v42 = vmul.f32 1.442695, %v2162_v7 }
 0x5ca   : > { %2770 = vpow2.f32 %v2163_v42 }
 0x5d7   : > { %v2771_v8 = vpop.eup %2770 }
 0x5d8   : > { %v2165_v18 = vsel %vm2158_vm5, %v2771_v8, 0.0 }
 0x5d9   : > { %2166 = vadd.xlane.f32.xlu0 %v2165_v18 }
 0x662   : > { %v2167_v51 = vpop.xlane.xlu0 %2166 }
 0x663   : > { %2772 = vrcp.f32 %v2167_v51 }
 0x670   : > { %v2773_v36 = vpop.eup %2772 }
 0x671   : > { %v2169_v9 = vmul.f32 %v2773_v36, %v2771_v8 }
 0x673   : > { %2170 = vst.msk [vmem:[%s297_s19] sm:$0x1] %vm2158_vm5, %v2169_v9 }
 0x674   : > { %2787 = shalt.err (!%p2784_p3)
}
 0x675   : > { %s2788_s17 = scalar_lea.hbm %s2182_s26, 16  ;;  %s2792_s22 = scalar_lea.hbm %s3693_s8, 32 }
 0x676   : > { %p2789_p4 = scmp.ne.s32.totalorder %s2182_s26, %s2788_s17  ;;  %p2793_p9 = scmp.lt.s32.totalorder %s2182_s26, %s3693_s8 }
 0x677   : > { %p2794_p10 = scmp.lt.s32.totalorder %s2792_s22, %s2788_s17 }
 0x678   : > { %p2790_p7 = pnand %p2789_p4, %p2929_p5 }
 0x679   : > { %p2795_p11 = por %p2794_p10, %p2793_p9 }
 0x67a   : > { %p2791_p8 = pneg %p2790_p7 }
 0x67c   : > { %p2796_p12 = pnand %p2795_p11, %p2791_p8 }
 0x67e   : > { %2799 = shalt.err (!%p2796_p12)
}
 0x67f   : > { %2565 = dma.vmem_to_hbm [thread:$0]  (%p2929_p5), %s2185_s23, 16, %s2182_s26, %s2172_s10  }
 0x680 PF: > { %p2571_p13 = scmp.ge.s32.totalorder %s2834_s30, 2  ;;  %s2196_s25 = sand.u32 1, %s2822_s27  }
 0x681   : > { %s2197_s12 = scalar_lea.sflag [#allocation3], %s2196_s25 }
 0x682   : > { %p2568_p0 = pnand %p2571_p13, %p2933_p6 }
 0x684   : > { %p2569_p1 = pneg %p2568_p0 }
 0x686   : > { %2817 = dma.done.wait (%p2569_p1), %s2197_s12, 16  }
 0x687   : > { %2819 = vsyncadd (%p2569_p1), %s2197_s12, 4294967280  ;;  %p18_p2 = scmp.ge.s32.totalorder %s2916_s11, 4   ;;  %s3736_s27 = smov %s2826_s28 }
 0x688   : > { %s3737_s28 = smov %s2830_s29  ;;  %s3738_s29 = smov %s2927_s14 }
 0x689   : > { %s3739_s30 = smov %s2916_s11  ;;  %20 = sbr.rel (!%p18_p2) target bundleno = 3 (0x3), region = 104 }
 0x68e   :  { %2201 = vsyncpa [#allocation3], 1 }
 0x68f   :  { %2203 = vsyncpa [#allocation3 + $0x1], 1 }

</bundles_post_ra>
